<compile_context>
chip_gen: v6e
topology: v6e:2x2x1
jax: 0.10.0
libtpu: 0.0.40
codegen_flags: <defaults>
</compile_context>

<pallas_src>
import functools
import math

import jax
import jax.numpy as jnp
from jax.experimental import pallas as pl
from jax.experimental.pallas import tpu as pltpu


def _vmem_capacity_bytes():
    """Generation-aware physical VMEM (128 MiB v5e/v6e, 64 MiB v7x)."""
    try:
        info = pltpu.get_tpu_info()
        cap = getattr(info, "vmem_capacity_bytes", None)
        if cap:
            return int(cap)
    except Exception:
        pass
    return 64 * 2**20  # most conservative (v7x) fallback


def _pick_channel_tile(dim, max_tile):
    """Largest multiple-of-128 divisor of `dim` that is <= max_tile, else dim."""
    if dim <= max_tile or dim % 128 != 0:
        return dim
    for t in range(max_tile - max_tile % 128, 0, -128):
        if dim % t == 0:
            return t
    return dim


def _plan_tiles(F, CI, CO, batch_hint=8):
    """Choose (freq_tile, ci_tile, co_tile) against the per-generation VMEM cap."""
    cap = _vmem_capacity_bytes()
    budget = int(cap * 0.6)                     # headroom for compiler scratch
    max_ch = 1024 if cap >= 96 * 2**20 else 512  # bigger lane tiles on 128 MiB parts
    tk = _pick_channel_tile(CI, max_ch)
    tn = _pick_channel_tile(CO, max_ch)
    nn = CO // tn

    def need(tf):  # double-buffered x (f32) + w (bf16) + out (f32) blocks
        xb = 2 * tf * batch_hint * tk * 4
        wb = 2 * tf * tk * tn * 2
        ob = 2 * tf * batch_hint * tn * 4
        return 2 * (xb + wb + ob)

    candidates = [32, 16, 8, 4]
    fitting = [t for t in candidates if need(t) <= budget] or [4]
    tf = fitting[0]
    psteps = lambda t: pl.cdiv(F, t) * nn       # product of "parallel" grid axes
    if psteps(tf) % 2 == 1:
        # v7x megacore: prefer an even parallel-step count (2 TensorCores),
        # but never drop the frequency tile by more than 2x for it.
        even = [t for t in fitting if t >= tf // 2 and psteps(t) % 2 == 0]
        if even:
            tf = even[0]
    return tf, tk, tn, cap


def _spectral_matmul_kernel(x_ref, w_ref, o_ref, *, accumulate):
    """One (freq-tile, Co-tile, Ci-tile) step of the complex mode contraction.

    x_ref : (2, TF, B,  tk)  f32   planes [xr, xi]
    w_ref : (2, TF, tk, tn)  bf16  planes [wr, wi]
    o_ref : (2, TF, B,  tn)  f32   planes [or, oi]
    """
    xr = x_ref[0].astype(jnp.bfloat16)   # native MXU input dtype, f32 accumulate
    xi = x_ref[1].astype(jnp.bfloat16)
    wr = w_ref[0]
    wi = w_ref[1]
    mm = functools.partial(jnp.einsum, "fbk,fkn->fbn",
                           preferred_element_type=jnp.float32)
    o_r = mm(xr, wr) - mm(xi, wi)
    o_i = mm(xr, wi) + mm(xi, wr)

    if accumulate:
        # Ci (k) is the innermost grid axis; the output block stays resident in
        # VMEM across it, so accumulate into it (pl.when init pattern).
        @pl.when(pl.program_id(2) == 0)
        def _():
            o_ref[...] = jnp.zeros_like(o_ref)

        o_ref[0] += o_r
        o_ref[1] += o_i
    else:
        # nk == 1 specialization: no zero-init, no read-modify-write.
        o_ref[0] = o_r
        o_ref[1] = o_i


def pack_weights(weights, freq_tile):
    """(Co, Ci, M1, M2) complex -> (2, Fp, Ci, Co) bfloat16, packed once at init.

    Plane 0 = real, plane 1 = imag, with W_t[f, i, o] = weights[o, i, f].
    Only the information-carrying halves are stored (no duplicated 2x2 real
    block) and in bf16 -> 4x less weight HBM traffic than the f32 block form.
    """
    CO, CI, M1, M2 = weights.shape
    F = M1 * M2
    Fp = pl.cdiv(F, freq_tile) * freq_tile
    w = weights.reshape(CO, CI, F)
    w = jnp.stack([jnp.real(w), jnp.imag(w)], axis=0)            # (2, Co, Ci, F)
    w = jnp.transpose(w, (0, 3, 2, 1)).astype(jnp.bfloat16)      # (2, F, Ci, Co)
    if Fp != F:                                                   # tiny tail pad only
        w = jnp.pad(w, ((0, 0), (0, Fp - F), (0, 0), (0, 0)))
    return w


def spectral_mul(x_ft, w_packed, freq_tile, tk, tn, vmem_cap):
    """Pallas implementation of einsum('bixy,oixy->boxy') for complex inputs.

    x_ft     : (B, Ci, M1, M2) complex
    w_packed : (2, Fp, Ci, Co) bfloat16   (from pack_weights)
    returns  : (B, Co, M1, M2) complex64
    """
    B, CI, M1, M2 = x_ft.shape
    F = M1 * M2
    _, Fp, K, CO = w_packed.shape
    assert K == CI

    # Pack activations: channels lane-dense, real/imag as separate leading planes.
    x = x_ft.reshape(B, CI, F)
    x = jnp.stack([jnp.real(x), jnp.imag(x)], axis=0).astype(jnp.float32)  # (2,B,Ci,F)
    x = jnp.transpose(x, (0, 3, 1, 2))                                     # (2,F,B,Ci)
    if Fp != F:
        x = jnp.pad(x, ((0, 0), (0, Fp - F), (0, 0), (0, 0)))

    nf, nn, nk = Fp // freq_tile, CO // tn, CI // tk

    # Explicit VMEM budget: double-buffered x/w/out blocks, capped below the
    # physical per-generation VMEM (64 MiB on v7x, 128 MiB on v5e/v6e).
    xb = 2 * freq_tile * B * tk * 4
    wb = 2 * freq_tile * tk * tn * 2
    ob = 2 * freq_tile * B * tn * 4
    need = 2 * (xb + wb + ob)
    vmem_limit = int(min(int(vmem_cap * 0.9), max(16 * 2**20, 2 * need)))

    kernel = functools.partial(_spectral_matmul_kernel, accumulate=(nk > 1))

    out = pl.pallas_call(
        kernel,
        out_shape=jax.ShapeDtypeStruct((2, Fp, B, CO), jnp.float32),
        grid=(nf, nn, nk),                                   # reduction axis last
        in_specs=[
            pl.BlockSpec((2, freq_tile, B, tk), lambda f, n, k: (0, f, 0, k)),
            pl.BlockSpec((2, freq_tile, tk, tn), lambda f, n, k: (0, f, k, n)),
        ],
        out_specs=pl.BlockSpec((2, freq_tile, B, tn), lambda f, n, k: (0, f, 0, n)),
        compiler_params=pltpu.CompilerParams(
            dimension_semantics=("parallel", "parallel", "arbitrary"),
            vmem_limit_bytes=vmem_limit,
        ),
    )(x, w_packed)

    out = out[:, :F]                                          # (2, F, B, Co)
    out_c = (out[0] + 1j * out[1]).astype(jnp.complex64)      # (F, B, Co)
    return jnp.transpose(out_c, (1, 2, 0)).reshape(B, CO, M1, M2)


class GSpectralConv2dPallas:
    """JAX/Pallas port of GFNO_steerable.GSpectralConv2d forward pass."""

    def __init__(self, in_channels, out_channels, modes, basis, coef, reflection=False):
        self.in_channels = in_channels
        self.out_channels = out_channels
        self.modes = modes
        self.n_modes = 2 * modes - 1
        self.group_size = (1 + reflection) * 4
        self.basis = basis            # (L, G, G, n_modes, modes) complex64
        self.coef = coef              # (L, out_ch, 1, in_ch, 1, 1, 1) float32
        self.weights = self._get_weight()
        # TODO(synk): at production channel counts the coef/basis low-rank
        # structure (weights = sum_l coef[l] x basis[l]) allows hoisting the
        # Ci contraction into one frequency-independent MXU matmul (M = B*G*F)
        # plus a small per-frequency L,G mix; here the dense per-frequency
        # weight is streamed instead, packed once into bf16 real/imag planes.
        CO, CI = self.weights.shape[:2]
        F = self.n_modes * self.modes
        self.freq_tile, self.tk, self.tn, self.vmem_cap = _plan_tiles(F, CI, CO)
        self.w_packed = pack_weights(self.weights, self.freq_tile)

    def _get_weight(self):
        L = self.basis.shape[0]
        c = self.coef.reshape(L, self.out_channels, self.in_channels)
        # weights[o, g1, i, g2, n, m] = sum_l coef[l, o, i] * basis[l, g1, g2, n, m]
        w = jnp.einsum('loi,lghnm->ogihnm', c.astype(jnp.complex64), self.basis)
        return w.reshape(self.group_size * self.out_channels,
                         self.group_size * self.in_channels,
                         self.n_modes, self.modes)

    def __call__(self, x):
        B, _, H, W = x.shape
        freq0_y = H // 2  # index of zero frequency after fftshift(fftfreq(H))
        # TODO(synk): FFT has no Pallas primitive; rfft2/irfft2/fftshift use XLA FFT.
        x_ft = jnp.fft.fftshift(jnp.fft.rfft2(x), axes=-2)
        x_ft = x_ft[..., freq0_y - self.modes + 1: freq0_y + self.modes, :self.modes]
        out_modes = spectral_mul(x_ft, self.w_packed, self.freq_tile,
                                 self.tk, self.tn, self.vmem_cap)   # Pallas (MXU)
        out_ft = jnp.zeros((B, self.weights.shape[0], H, W // 2 + 1),
                           dtype=jnp.complex64)
        out_ft = out_ft.at[..., freq0_y - self.modes + 1: freq0_y + self.modes,
                           :self.modes].set(out_modes)
        return jnp.fft.irfft2(jnp.fft.ifftshift(out_ft, axes=-2), s=(H, W))


if __name__ == "__main__":
    key = jax.random.PRNGKey(0)
    in_channels, out_channels, modes = 4, 4, 4
    reflection = False
    G = (1 + reflection) * 4
    n_modes = 2 * modes - 1
    L = 5                     # number of basis elements
    B, H, W = 2, 16, 16

    k1, k2, k3, k4 = jax.random.split(key, 4)

    # Deterministic synthetic steerable basis: (L, G, G, n_modes, modes) complex.
    basis = (jax.random.normal(k1, (L, G, G, n_modes, modes), dtype=jnp.float32)
             + 1j * jax.random.normal(k2, (L, G, G, n_modes, modes),
                                      dtype=jnp.float32)).astype(jnp.complex64)

    # coef: kaiming_uniform_(a=sqrt(5)) on shape (L, out, 1, in, 1, 1, 1)
    #   -> fan_in = out*in, bound = 1/sqrt(fan_in)
    bound = 1.0 / math.sqrt(out_channels * in_channels)
    coef = jax.random.uniform(k3, (L, out_channels, 1, in_channels, 1, 1, 1),
                              minval=-bound, maxval=bound, dtype=jnp.float32)

    layer = GSpectralConv2dPallas(in_channels, out_channels, modes,
                                  basis, coef, reflection)

    x = jax.random.normal(k4, (B, G * in_channels, H, W), dtype=jnp.float32)

    out = jax.block_until_ready(layer(x))

    # Pure-JAX reference (same math, complex einsum instead of the Pallas kernel).
    f0 = H // 2
    x_ft_ref = jnp.fft.fftshift(jnp.fft.rfft2(x), axes=-2)
    x_ft_ref = x_ft_ref[..., f0 - modes + 1: f0 + modes, :modes]
    ref_modes = jnp.einsum('bixy,oixy->boxy', x_ft_ref, layer.weights)
    out_ft_ref = jnp.zeros((B, layer.weights.shape[0], H, W // 2 + 1),
                           dtype=jnp.complex64)
    out_ft_ref = out_ft_ref.at[..., f0 - modes + 1: f0 + modes, :modes].set(ref_modes)
    ref = jnp.fft.irfft2(jnp.fft.ifftshift(out_ft_ref, axes=-2), s=(H, W))

    assert out.shape == (B, G * out_channels, H, W), out.shape
    # Kernel uses native bf16 MXU inputs (weights stored bf16, activations cast
    # in-kernel) with f32 accumulation; tolerance covers bf16 input rounding
    # plus reduction-order differences vs the f32 einsum reference, while any
    # real packing/sign bug would produce O(1) errors.
    assert jnp.allclose(out, ref, atol=2e-2, rtol=2e-2), "mismatch vs reference"
    print("KERNEL_OK")
</pallas_src>

<mosaic_0001>
module attributes {stable_mosaic.version = 11 : i64} {
  func.func @_spectral_matmul_kernel(%arg0: i32, %arg1: i32, %arg2: i32, %arg3: memref<2x16x2x16xf32, #tpu.memory_space<vmem>>, %arg4: memref<2x16x16x16xbf16, #tpu.memory_space<vmem>>, %arg5: memref<2x16x2x16xf32, #tpu.memory_space<vmem>>) attributes {dimension_semantics = [#tpu.dimension_semantics<parallel>, #tpu.dimension_semantics<parallel>, #tpu.dimension_semantics<arbitrary>], iteration_bounds = array<i64: 2, 1, 1>, scalar_prefetch = 0 : i64, scratch_operands = 0 : i64, tpu.core_type = #tpu.core_type<tc>, window_params = [{transform_indices = @transform_0, window_bounds = array<i64: 2, 16, 2, 16>}, {transform_indices = @transform_1, window_bounds = array<i64: 2, 16, 16, 16>}, {transform_indices = @transform_2, window_bounds = array<i64: 2, 16, 2, 16>}]} {
    %c0 = arith.constant 0 : index
    %c0_0 = arith.constant 0 : index
    %c0_1 = arith.constant 0 : index
    %c0_2 = arith.constant 0 : index
    %0 = vector.load %arg3[%c0, %c0_0, %c0_1, %c0_2] : memref<2x16x2x16xf32, #tpu.memory_space<vmem>>, vector<1x16x2x16xf32>
    %1 = vector.shape_cast %0 : vector<1x16x2x16xf32> to vector<16x2x16xf32>
    %2 = arith.truncf %1 : vector<16x2x16xf32> to vector<16x2x16xbf16>
    %c1 = arith.constant 1 : index
    %c0_3 = arith.constant 0 : index
    %c0_4 = arith.constant 0 : index
    %c0_5 = arith.constant 0 : index
    %3 = vector.load %arg3[%c1, %c0_3, %c0_4, %c0_5] : memref<2x16x2x16xf32, #tpu.memory_space<vmem>>, vector<1x16x2x16xf32>
    %4 = vector.shape_cast %3 : vector<1x16x2x16xf32> to vector<16x2x16xf32>
    %5 = arith.truncf %4 : vector<16x2x16xf32> to vector<16x2x16xbf16>
    %c0_6 = arith.constant 0 : index
    %c0_7 = arith.constant 0 : index
    %c0_8 = arith.constant 0 : index
    %c0_9 = arith.constant 0 : index
    %6 = vector.load %arg4[%c0_6, %c0_7, %c0_8, %c0_9] : memref<2x16x16x16xbf16, #tpu.memory_space<vmem>>, vector<1x16x16x16xbf16>
    %7 = vector.shape_cast %6 : vector<1x16x16x16xbf16> to vector<16x16x16xbf16>
    %c1_10 = arith.constant 1 : index
    %c0_11 = arith.constant 0 : index
    %c0_12 = arith.constant 0 : index
    %c0_13 = arith.constant 0 : index
    %8 = vector.load %arg4[%c1_10, %c0_11, %c0_12, %c0_13] : memref<2x16x16x16xbf16, #tpu.memory_space<vmem>>, vector<1x16x16x16xbf16>
    %9 = vector.shape_cast %8 : vector<1x16x16x16xbf16> to vector<16x16x16xbf16>
    "tpu.trace_start"() <{level = 10 : i32, message = "fbk,fkn->fbn"}> : () -> ()
    %cst = arith.constant dense<0.000000e+00> : vector<16x2x16xf32>
    %10 = tpu.matmul %2, %7, %cst {dimension_numbers = #tpu.dot_dimension_numbers<[2], [1], [1], [2], [0, 0, 0, 1, 1, 2], [0], [0]>} : vector<16x2x16xbf16>, vector<16x16x16xbf16>, vector<16x2x16xf32> -> vector<16x2x16xf32>
    %cst_14 = arith.constant dense<0.000000e+00> : vector<16x2x16xf32>
    %11 = tpu.matmul %5, %9, %cst_14 {dimension_numbers = #tpu.dot_dimension_numbers<[2], [1], [1], [2], [0, 0, 0, 1, 1, 2], [0], [0]>} : vector<16x2x16xbf16>, vector<16x16x16xbf16>, vector<16x2x16xf32> -> vector<16x2x16xf32>
    "tpu.trace_stop"() : () -> ()
    %12 = arith.subf %10, %11 : vector<16x2x16xf32>
    "tpu.trace_start"() <{level = 10 : i32, message = "fbk,fkn->fbn"}> : () -> ()
    %cst_15 = arith.constant dense<0.000000e+00> : vector<16x2x16xf32>
    %13 = tpu.matmul %2, %9, %cst_15 {dimension_numbers = #tpu.dot_dimension_numbers<[2], [1], [1], [2], [0, 0, 0, 1, 1, 2], [0], [0]>} : vector<16x2x16xbf16>, vector<16x16x16xbf16>, vector<16x2x16xf32> -> vector<16x2x16xf32>
    %cst_16 = arith.constant dense<0.000000e+00> : vector<16x2x16xf32>
    %14 = tpu.matmul %5, %7, %cst_16 {dimension_numbers = #tpu.dot_dimension_numbers<[2], [1], [1], [2], [0, 0, 0, 1, 1, 2], [0], [0]>} : vector<16x2x16xbf16>, vector<16x16x16xbf16>, vector<16x2x16xf32> -> vector<16x2x16xf32>
    "tpu.trace_stop"() : () -> ()
    %15 = arith.addf %13, %14 : vector<16x2x16xf32>
    %c0_17 = arith.constant 0 : index
    %c0_18 = arith.constant 0 : index
    %c0_19 = arith.constant 0 : index
    %c0_20 = arith.constant 0 : index
    %16 = vector.load %arg5[%c0_17, %c0_18, %c0_19, %c0_20] : memref<2x16x2x16xf32, #tpu.memory_space<vmem>>, vector<1x16x2x16xf32>
    %17 = vector.shape_cast %16 : vector<1x16x2x16xf32> to vector<16x2x16xf32>
    %18 = vector.shape_cast %12 : vector<16x2x16xf32> to vector<1x16x2x16xf32>
    tpu.vector_store %arg5[%c0_17, %c0_18, %c0_19, %c0_20], %18 {strides = array<i32>} : memref<2x16x2x16xf32, #tpu.memory_space<vmem>>, vector<1x16x2x16xf32>,
    %c1_21 = arith.constant 1 : index
    %c0_22 = arith.constant 0 : index
    %c0_23 = arith.constant 0 : index
    %c0_24 = arith.constant 0 : index
    %19 = vector.load %arg5[%c1_21, %c0_22, %c0_23, %c0_24] : memref<2x16x2x16xf32, #tpu.memory_space<vmem>>, vector<1x16x2x16xf32>
    %20 = vector.shape_cast %19 : vector<1x16x2x16xf32> to vector<16x2x16xf32>
    %21 = vector.shape_cast %15 : vector<16x2x16xf32> to vector<1x16x2x16xf32>
    tpu.vector_store %arg5[%c1_21, %c0_22, %c0_23, %c0_24], %21 {strides = array<i32>} : memref<2x16x2x16xf32, #tpu.memory_space<vmem>>, vector<1x16x2x16xf32>,
    return
  }
  func.func @transform_0(%arg0: i32, %arg1: i32, %arg2: i32) -> (i32, i32, i32, i32) {
    %c0_i32 = arith.constant 0 : i32
    %c0_i32_0 = arith.constant 0 : i32
    %c0_i32_1 = arith.constant 0 : i32
    return %c0_i32, %arg0, %c0_i32_0, %arg2 : i32, i32, i32, i32
  }
  func.func @transform_1(%arg0: i32, %arg1: i32, %arg2: i32) -> (i32, i32, i32, i32) {
    %c0_i32 = arith.constant 0 : i32
    %c0_i32_0 = arith.constant 0 : i32
    return %c0_i32, %arg0, %arg2, %arg1 : i32, i32, i32, i32
  }
  func.func @transform_2(%arg0: i32, %arg1: i32, %arg2: i32) -> (i32, i32, i32, i32) {
    %c0_i32 = arith.constant 0 : i32
    %c0_i32_0 = arith.constant 0 : i32
    %c0_i32_1 = arith.constant 0 : i32
    return %c0_i32, %arg0, %c0_i32_0, %arg1 : i32, i32, i32, i32
  }
}

</mosaic_0001>

<bundles_post_ra>
// kernel: tpu_custom_call.1
= control target key start
LH: loop header
LB: loop body
LE: loop exit
PB: predicated region body
PF: predicated region fallthrough
CT: control target
= control target key end

     0   :  { %s4782_s9 = smov 0   ;;  %s4784_s10 = smov 0   ;;  %s5689_s0 = inlined_call_operand.vmem [shape: f32[2,32,2,16], index: 0, kind: input, shape index: {}]   ;;  %s5690_s1 = inlined_call_operand.vmem [shape: bf16[2,32,16,16], index: 1, kind: input, shape index: {}]   ;;  %s5691_s2 = inlined_call_operand.vmem [shape: f32[2,32,2,16], index: 2, kind: output, shape index: {}]  }
   0x1   :  { %s4786_s11 = smov 0   ;;  %s4788_s12 = smov 0  }
   0x2   :  { %s4790_s13 = smov 0  }
   0x3 LB: > { %s31_s14 = sadd.s32 1, %s4759_s12  ;;  %s3955_s15 = sadd.s32 4294967295, %s4763_s13   ;;  %s4763_s13 = sphi %s4790_s13, %s12_s13   ;;  %s4759_s12 = sphi %s4788_s12, %s5706_s12   ;;  %s4755_s11 = sphi %s4786_s11, %s5705_s11   ;;  %s4751_s10 = sphi %s4784_s10, %s5704_s10   ;;  %s4747_s9 = sphi %s4782_s9, %s5703_s9  }
   0x4   : > { %p33_p0 = scmp.ge.s32.totalorder %s31_s14, 2  ;;  %p47_p1 = scmp.ne.s32.totalorder %s4751_s10, %s4747_s9 }
   0x5   : > { %p48_p2 = scmp.eq.s32.totalorder %s4763_s13, 0  ;;  %p109_p4 = scmp.eq.s32.totalorder %s3955_s15, 1 }
   0x6   : > { %s5708_s14 = smov (%p33_p0, %s31_s14), 0  ;;  %s40_s18 = sadd.s32 1, %s4751_s10 }
   0x7   : > { %p4814_p3 = por %p48_p2, %p47_p1  ;;  %s35_s17 = ssub.s32 %s4759_s12, %s5708_s14 }
   0x8   : > { %p38_p5 = scmp.eq.s32.totalorder %s35_s17, 0  ;;  %p4821_p6 = por %p109_p4, %p47_p1 }
   0x9   : > { %p3958_p7 = scmp.ge.s32.totalorder %s4763_s13, 2 }
   0xa   : > { %s4826_s20 = scalar_select %p38_p5, %s4751_s10, %s40_s18  }
   0xb   : > { %131 = sbr.rel (%p3958_p7) target bundleno = 44 (0x2c), region = 16 }
  0x10   : > { %134 = sbr.rel (!%p4814_p3) target bundleno = 24 (0x18), region = 20  ;;  %s136_s21 = sand.u32 (%p4814_p3), 1, %s4751_s10  }
  0x11   : > { %s4135_s22 = sshll.u32 (%p4814_p3), %s4759_s12, 5  ;;  %s3959_s23 = sshll.u32 (%p4814_p3), %s136_s21, 6 }
  0x12   : > { %s142_s26 = scalar_lea.vmem (%p4814_p3), %s5689_s0, %s4135_s22  ;;  %s138_s27 = scalar_lea.vmem (%p4814_p3), [#allocation2], %s3959_s23 }
  0x13   : > { %v159_v0 = vld [vmem:[%s142_s26] sm:$0xff] (%p4814_p3)   ;;  %v167_v1 = vld [vmem:[%s142_s26 + $0x8] sm:$0xff] (%p4814_p3)   ;;  %v175_v2 = vld [vmem:[%s142_s26 + $0x10] sm:$0xff] (%p4814_p3)  }
  0x14   : > { %160 = vst [vmem:[%s138_s27] sm:$0xff] (%p4814_p3), %v159_v0   ;;  %168 = vst [vmem:[%s138_s27 + $0x8] sm:$0xff] (%p4814_p3), %v167_v1   ;;  %v183_v3 = vld [vmem:[%s142_s26 + $0x18] sm:$0xff] (%p4814_p3)   ;;  %v191_v4 = vld [vmem:[%s142_s26 + $0x40] sm:$0xff] (%p4814_p3)  }
  0x15   : > { %176 = vst [vmem:[%s138_s27 + $0x10] sm:$0xff] %v175_v2   ;;  %v199_v5 = vld [vmem:[%s142_s26 + $0x48] sm:$0xff]   ;;  %184 = vst [vmem:[%s138_s27 + $0x18] sm:$0xff] %v183_v3   ;;  %v207_v6 = vld [vmem:[%s142_s26 + $0x50] sm:$0xff]  }
  0x16   : > { %192 = vst [vmem:[%s138_s27 + $0x20] sm:$0xff] %v191_v4   ;;  %200 = vst [vmem:[%s138_s27 + $0x28] sm:$0xff] %v199_v5   ;;  %v215_v7 = vld [vmem:[%s142_s26 + $0x58] sm:$0xff]  }
  0x17   : > { %208 = vst [vmem:[%s138_s27 + $0x30] sm:$0xff] %v207_v6   ;;  %216 = vst [vmem:[%s138_s27 + $0x38] sm:$0xff] %v215_v7  }
  0x18 PF: > { %310 = sbr.rel (!%p4814_p3) target bundleno = 44 (0x2c), region = 61  ;;  %s312_s28 = sand.u32 (%p4814_p3), 1, %s4751_s10  }
  0x19   : > { %s4137_s29 = sshll.u32 (%p4814_p3), %s4759_s12, 7  ;;  %s3962_s30 = sshll.u32 (%p4814_p3), %s312_s28, 8 }
  0x1a   : > { %s4843_s5 = scalar_lea.vmem (%p4814_p3), %s5690_s1, %s4137_s29  ;;  %s4848_s6 = scalar_lea.vmem (%p4814_p3), [#allocation3], %s3962_s30 }
  0x1b   : > { %v338_v8 = vld [vmem:[%s4843_s5] sm:$0xff] (%p4814_p3)   ;;  %v342_v9 = vld [vmem:[%s4843_s5 + $0x8] sm:$0xff] (%p4814_p3)   ;;  %v346_v10 = vld [vmem:[%s4843_s5 + $0x10] sm:$0xff] (%p4814_p3)  }
  0x1c   : > { %339 = vst [vmem:[%s4848_s6] sm:$0xff] (%p4814_p3), %v338_v8   ;;  %343 = vst [vmem:[%s4848_s6 + $0x8] sm:$0xff] (%p4814_p3), %v342_v9   ;;  %v350_v11 = vld [vmem:[%s4843_s5 + $0x18] sm:$0xff] (%p4814_p3)   ;;  %v354_v12 = vld [vmem:[%s4843_s5 + $0x20] sm:$0xff] (%p4814_p3)  }
  0x1d   : > { %347 = vst [vmem:[%s4848_s6 + $0x10] sm:$0xff] %v346_v10   ;;  %v358_v13 = vld [vmem:[%s4843_s5 + $0x28] sm:$0xff]   ;;  %351 = vst [vmem:[%s4848_s6 + $0x18] sm:$0xff] %v350_v11   ;;  %v362_v14 = vld [vmem:[%s4843_s5 + $0x30] sm:$0xff]  }
  0x1e   : > { %355 = vst [vmem:[%s4848_s6 + $0x20] sm:$0xff] %v354_v12   ;;  %359 = vst [vmem:[%s4848_s6 + $0x28] sm:$0xff] %v358_v13   ;;  %v366_v15 = vld [vmem:[%s4843_s5 + $0x38] sm:$0xff]   ;;  %v370_v16 = vld [vmem:[%s4843_s5 + $0x40] sm:$0xff]  }
  0x1f   : > { %363 = vst [vmem:[%s4848_s6 + $0x30] sm:$0xff] %v362_v14   ;;  %367 = vst [vmem:[%s4848_s6 + $0x38] sm:$0xff] %v366_v15   ;;  %v374_v17 = vld [vmem:[%s4843_s5 + $0x48] sm:$0xff]   ;;  %v378_v18 = vld [vmem:[%s4843_s5 + $0x50] sm:$0xff]  }
  0x20   : > { %371 = vst [vmem:[%s4848_s6 + $0x40] sm:$0xff] %v370_v16   ;;  %v382_v19 = vld [vmem:[%s4843_s5 + $0x58] sm:$0xff]   ;;  %375 = vst [vmem:[%s4848_s6 + $0x48] sm:$0xff] %v374_v17   ;;  %v386_v20 = vld [vmem:[%s4843_s5 + $0x60] sm:$0xff]  }
  0x21   : > { %379 = vst [vmem:[%s4848_s6 + $0x50] sm:$0xff] %v378_v18   ;;  %383 = vst [vmem:[%s4848_s6 + $0x58] sm:$0xff] %v382_v19   ;;  %v390_v21 = vld [vmem:[%s4843_s5 + $0x68] sm:$0xff]   ;;  %v394_v22 = vld [vmem:[%s4843_s5 + $0x70] sm:$0xff]  }
  0x22   : > { %387 = vst [vmem:[%s4848_s6 + $0x60] sm:$0xff] %v386_v20   ;;  %391 = vst [vmem:[%s4848_s6 + $0x68] sm:$0xff] %v390_v21   ;;  %v398_v23 = vld [vmem:[%s4843_s5 + $0x78] sm:$0xff]   ;;  %v402_v24 = vld [vmem:[%s4843_s5 + $0x100] sm:$0xff]  }
  0x23   : > { %395 = vst [vmem:[%s4848_s6 + $0x70] sm:$0xff] %v394_v22   ;;  %v406_v25 = vld [vmem:[%s4843_s5 + $0x108] sm:$0xff]   ;;  %399 = vst [vmem:[%s4848_s6 + $0x78] sm:$0xff] %v398_v23   ;;  %v410_v26 = vld [vmem:[%s4843_s5 + $0x110] sm:$0xff]  }
  0x24   : > { %403 = vst [vmem:[%s4848_s6 + $0x80] sm:$0xff] %v402_v24   ;;  %407 = vst [vmem:[%s4848_s6 + $0x88] sm:$0xff] %v406_v25   ;;  %v414_v27 = vld [vmem:[%s4843_s5 + $0x118] sm:$0xff]   ;;  %v418_v28 = vld [vmem:[%s4843_s5 + $0x120] sm:$0xff]  }
  0x25   : > { %411 = vst [vmem:[%s4848_s6 + $0x90] sm:$0xff] %v410_v26   ;;  %415 = vst [vmem:[%s4848_s6 + $0x98] sm:$0xff] %v414_v27   ;;  %v422_v29 = vld [vmem:[%s4843_s5 + $0x128] sm:$0xff]   ;;  %v426_v30 = vld [vmem:[%s4843_s5 + $0x130] sm:$0xff]  }
  0x26   : > { %419 = vst [vmem:[%s4848_s6 + $0xa0] sm:$0xff] %v418_v28   ;;  %v430_v31 = vld [vmem:[%s4843_s5 + $0x138] sm:$0xff]   ;;  %423 = vst [vmem:[%s4848_s6 + $0xa8] sm:$0xff] %v422_v29   ;;  %v434_v32 = vld [vmem:[%s4843_s5 + $0x140] sm:$0xff]  }
  0x27   : > { %427 = vst [vmem:[%s4848_s6 + $0xb0] sm:$0xff] %v426_v30   ;;  %431 = vst [vmem:[%s4848_s6 + $0xb8] sm:$0xff] %v430_v31   ;;  %v438_v33 = vld [vmem:[%s4843_s5 + $0x148] sm:$0xff]   ;;  %v442_v34 = vld [vmem:[%s4843_s5 + $0x150] sm:$0xff]  }
  0x28   : > { %435 = vst [vmem:[%s4848_s6 + $0xc0] sm:$0xff] %v434_v32   ;;  %439 = vst [vmem:[%s4848_s6 + $0xc8] sm:$0xff] %v438_v33   ;;  %v446_v35 = vld [vmem:[%s4843_s5 + $0x158] sm:$0xff]   ;;  %v450_v36 = vld [vmem:[%s4843_s5 + $0x160] sm:$0xff]  }
  0x29   : > { %443 = vst [vmem:[%s4848_s6 + $0xd0] sm:$0xff] %v442_v34   ;;  %v454_v37 = vld [vmem:[%s4843_s5 + $0x168] sm:$0xff]   ;;  %447 = vst [vmem:[%s4848_s6 + $0xd8] sm:$0xff] %v446_v35   ;;  %v458_v38 = vld [vmem:[%s4843_s5 + $0x170] sm:$0xff]  }
  0x2a   : > { %451 = vst [vmem:[%s4848_s6 + $0xe0] sm:$0xff] %v450_v36   ;;  %455 = vst [vmem:[%s4848_s6 + $0xe8] sm:$0xff] %v454_v37   ;;  %v462_v39 = vld [vmem:[%s4843_s5 + $0x178] sm:$0xff]  }
  0x2b   : > { %459 = vst [vmem:[%s4848_s6 + $0xf0] sm:$0xff] %v458_v38   ;;  %463 = vst [vmem:[%s4848_s6 + $0xf8] sm:$0xff] %v462_v39  }
  0x2c PF: > { %p3966_p8 = scmp.ge.s32.totalorder %s4763_s13, 1  ;;  %p616_p9 = scmp.lt.s32.totalorder %s4763_s13, 3 }
  0x2e   : > { %p617_p10 = pnand %p3966_p8, %p616_p9 }
  0x30   : > { %620 = sbr.rel (%p617_p10) target bundleno = 512 (0x200), region = 102 }
  0x35   : > { %s623_s7 = sand.u32 1, %s4747_s9   ;;  %v4765_v40 = vmov 0.0   ;;  %vm4766_vm0 = vmmov 0   ;;  %vm795_vm1 = vcmask 130048   ;;  %vm3654_vm2 = vcmask 123904   ;;  %s4138_s18 = sshll.u32 (%p4821_p6), %s4755_s11, 5 }
  0x36   : > { %4267 = vmatprep.subr.bf16.mxu0 %v4765_v40  ;;  %4273 = vmatprep.subr.bf16.mxu1 %v4765_v40  ;;  %s3968_s8 = sshll.u32 %s623_s7, 8  ;;  %s4916_s15 = sshll.u32 %s623_s7, 6 }
  0x37   : > { %4269 = vmatprep.mubr.msk.bf16.mxu0 %vm4766_vm0, %v4765_v40  ;;  %4275 = vmatprep.mubr.msk.bf16.mxu1 %vm4766_vm0, %v4765_v40  ;;  %s4922_s16 = scalar_lea.vmem [#allocation3], %s3968_s8  ;;  %s4932_s9 = scalar_lea.vmem [#allocation2], %s4916_s15 }
  0x38   : > { %v4925_v41 = vld [vmem:[%s4922_s16] sm:$0xff]   ;;  %v4928_v42 = vld [vmem:[%s4922_s16 + $0x8] sm:$0xff]   ;;  %v4943_v47 = vld [vmem:[%s4922_s16 + $0x10] sm:$0xff]   ;;  %s5532_s17 = scalar_lea.vmem [#allocation4], %s4916_s15  ;;  %s3698_s23 = scalar_lea.vmem (%p4821_p6), %s5691_s2, %s4138_s18 }
  0x39   : > { %4268 = vmatpush3.bf16.msra.mxu0 %v4925_v41  ;;  %v659_v43 = vld [vmem:[%s4932_s9] sm:$0x3]  ;;  %v660_v44 = vld [vmem:[%s4932_s9 + $0x2] sm:$0x3]  ;;  %4274 = vmatpush3.bf16.msra.mxu1 %v4928_v42  ;;  %v4947_v48 = vld [vmem:[%s4922_s16 + $0x18] sm:$0xff]  }
  0x3a   : > { %v4937_v45 = vpack.c.bf16 %v659_v43, %v659_v43  ;;  %v4939_v46 = vpack.c.bf16 %v660_v44, %v660_v44  ;;  %4279 = vmatprep.subr.bf16.mxu0 %v4765_v40  ;;  %4285 = vmatprep.subr.bf16.mxu1 %v4765_v40  ;;  %v661_v49 = vld [vmem:[%s4932_s9 + $0x4] sm:$0x3]  ;;  %v662_v50 = vld [vmem:[%s4932_s9 + $0x6] sm:$0x3]  ;;  %v4971_v54 = vld [vmem:[%s4922_s16 + $0x28] sm:$0xff]  }
  0x3b   : > { %v4962_v51 = vpack.c.bf16 %v661_v49, %v661_v49  ;;  %v4965_v52 = vpack.c.bf16 %v662_v50, %v662_v50  ;;  %v4968_v53 = vld [vmem:[%s4922_s16 + $0x20] sm:$0xff]   ;;  %v663_v55 = vld [vmem:[%s4932_s9 + $0x8] sm:$0x3]  ;;  %v664_v56 = vld [vmem:[%s4932_s9 + $0xa] sm:$0x3] }
  0x3c   : > { %4270 = vmatmul.mubr.msk.bf16.vlgmr.msra.gmra.mxu0 %vm795_vm1, %v4937_v45  ;;  %4276 = vmatmul.mubr.msk.bf16.vlgmr.msra.gmra.mxu1 %vm795_vm1, %v4939_v46  ;;  %v4986_v57 = vpack.c.bf16 %v663_v55, %v663_v55  ;;  %v4989_v58 = vpack.c.bf16 %v664_v56, %v664_v56  ;;  %v4992_v59 = vld [vmem:[%s4922_s16 + $0x30] sm:$0xff]   ;;  %v4995_v60 = vld [vmem:[%s4922_s16 + $0x38] sm:$0xff]   ;;  %v665_v61 = vld [vmem:[%s4932_s9 + $0xc] sm:$0x3] }
  0x3d   : > { %4280 = vmatpush3.bf16.msra.mxu0 %v4943_v47  ;;  %4286 = vmatpush3.bf16.msra.mxu1 %v4947_v48  ;;  %v666_v62 = vld [vmem:[%s4932_s9 + $0xe] sm:$0x3]  ;;  %v5010_v63 = vpack.c.bf16 %v665_v61, %v665_v61  ;;  %v5016_v1 = vld [vmem:[%s4922_s16 + $0x40] sm:$0xff]   ;;  %v667_v3 = vld [vmem:[%s4932_s9 + $0x10] sm:$0x3] }
  0x3e   : > { %4281 = vmatprep.mubr.msk.bf16.mxu0 %vm4766_vm0, %v4765_v40  ;;  %4287 = vmatprep.mubr.msk.bf16.mxu1 %vm4766_vm0, %v4765_v40  ;;  %v5013_v0 = vpack.c.bf16 %v666_v62, %v666_v62  ;;  %v5019_v2 = vld [vmem:[%s4922_s16 + $0x48] sm:$0xff]   ;;  %v668_v4 = vld [vmem:[%s4932_s9 + $0x12] sm:$0x3]  ;;  %v5034_v5 = vpack.c.bf16 %v667_v3, %v667_v3  ;;  %v5043_v8 = vld [vmem:[%s4922_s16 + $0x58] sm:$0xff]  }
  0x3f   : > { %4291 = vmatprep.subr.bf16.mxu0 %v4765_v40  ;;  %4297 = vmatprep.subr.bf16.mxu1 %v4765_v40  ;;  %v5037_v6 = vpack.c.bf16 %v668_v4, %v668_v4  ;;  %v5040_v7 = vld [vmem:[%s4922_s16 + $0x50] sm:$0xff]   ;;  %v5064_v13 = vld [vmem:[%s4922_s16 + $0x60] sm:$0xff]   ;;  %v5067_v14 = vld [vmem:[%s4922_s16 + $0x68] sm:$0xff]  }
  0x40   : > { %v669_v9 = vld [vmem:[%s4932_s9 + $0x14] sm:$0x3]  ;;  %v670_v10 = vld [vmem:[%s4932_s9 + $0x16] sm:$0x3]  ;;  %v671_v15 = vld [vmem:[%s4932_s9 + $0x18] sm:$0x3] }
  0x41   : > { %v5058_v11 = vpack.c.bf16 %v669_v9, %v669_v9  ;;  %v5061_v12 = vpack.c.bf16 %v670_v10, %v670_v10  ;;  %v672_v16 = vld [vmem:[%s4932_s9 + $0x1a] sm:$0x3]  ;;  %v5082_v17 = vpack.c.bf16 %v671_v15, %v671_v15  ;;  %v5088_v19 = vld [vmem:[%s4922_s16 + $0x70] sm:$0xff]   ;;  %v673_v21 = vld [vmem:[%s4932_s9 + $0x1c] sm:$0x3] }
  0x42   : > { %v5085_v18 = vpack.c.bf16 %v672_v16, %v672_v16  ;;  %v5091_v20 = vld [vmem:[%s4922_s16 + $0x78] sm:$0xff]   ;;  %v5106_v23 = vpack.c.bf16 %v673_v21, %v673_v21  ;;  %v5112_v25 = vld [vmem:[%s4922_s16 + $0x80] sm:$0xff]   ;;  %v5115_v26 = vld [vmem:[%s4922_s16 + $0x88] sm:$0xff]  }
  0x43   : > { %v674_v22 = vld [vmem:[%s4932_s9 + $0x1e] sm:$0x3]  ;;  %v3970_v27 = vld [vmem:[%s4932_s9 + $0x20] sm:$0x3]  ;;  %v3971_v28 = vld [vmem:[%s4932_s9 + $0x22] sm:$0x3] }
  0x44   : > { %4282 = vmatmul.mubr.msk.bf16.vlgmr.msra.gmra.mxu0 %vm795_vm1, %v4962_v51  ;;  %4288 = vmatmul.mubr.msk.bf16.vlgmr.msra.gmra.mxu1 %vm795_vm1, %v4965_v52  ;;  %5697 = vst [vmem:[#allocation5_spill] sm:$0xff] %v5085_v18  ;;  %5698 = vst [vmem:[#allocation6_spill] sm:$0xff] %v5106_v23  ;;  %v5109_v24 = vpack.c.bf16 %v674_v22, %v674_v22  ;;  %v5130_v29 = vpack.c.bf16 %v3970_v27, %v3970_v27  ;;  %v5136_v31 = vld [vmem:[%s4922_s16 + $0x90] sm:$0xff]   ;;  %v5139_v32 = vld [vmem:[%s4922_s16 + $0x98] sm:$0xff]  }
  0x45   : > { %4292 = vmatpush3.bf16.msra.mxu0 %v4968_v53  ;;  %4298 = vmatpush3.bf16.msra.mxu1 %v4971_v54  ;;  %v5133_v30 = vpack.c.bf16 %v3971_v28, %v3971_v28  ;;  %v3972_v33 = vld [vmem:[%s4932_s9 + $0x24] sm:$0x3]  ;;  %v3973_v34 = vld [vmem:[%s4932_s9 + $0x26] sm:$0x3]  ;;  %v5163_v38 = vld [vmem:[%s4922_s16 + $0xa8] sm:$0xff]  }
  0x46   : > { %4293 = vmatprep.mubr.msk.bf16.mxu0 %vm4766_vm0, %v4765_v40  ;;  %4299 = vmatprep.mubr.msk.bf16.mxu1 %vm4766_vm0, %v4765_v40  ;;  %5699 = vst [vmem:[#allocation7_spill] sm:$0xff] %v5109_v24  ;;  %v5154_v35 = vpack.c.bf16 %v3972_v33, %v3972_v33  ;;  %v5157_v36 = vpack.c.bf16 %v3973_v34, %v3973_v34  ;;  %v5160_v37 = vld [vmem:[%s4922_s16 + $0xa0] sm:$0xff]   ;;  %v3974_v39 = vld [vmem:[%s4932_s9 + $0x28] sm:$0x3]  ;;  %v3975_v43 = vld [vmem:[%s4932_s9 + $0x2a] sm:$0x3] }
  0x47   : > { %4303 = vmatprep.subr.bf16.mxu0 %v4765_v40  ;;  %4309 = vmatprep.subr.bf16.mxu1 %v4765_v40  ;;  %v5178_v44 = vpack.c.bf16 %v3974_v39, %v3974_v39  ;;  %v5181_v49 = vpack.c.bf16 %v3975_v43, %v3975_v43  ;;  %v5184_v50 = vld [vmem:[%s4922_s16 + $0xb0] sm:$0xff]   ;;  %v5187_v55 = vld [vmem:[%s4922_s16 + $0xb8] sm:$0xff]   ;;  %v3976_v56 = vld [vmem:[%s4932_s9 + $0x2c] sm:$0x3] }
  0x48   : > { %v3977_v61 = vld [vmem:[%s4932_s9 + $0x2e] sm:$0x3]  ;;  %v5202_v62 = vpack.c.bf16 %v3976_v56, %v3976_v56  ;;  %v5208_v4 = vld [vmem:[%s4922_s16 + $0xc0] sm:$0xff]   ;;  %v3978_v10 = vld [vmem:[%s4932_s9 + $0x30] sm:$0x3] }
  0x49   : > { %v5205_v3 = vpack.c.bf16 %v3977_v61, %v3977_v61  ;;  %v5211_v9 = vld [vmem:[%s4922_s16 + $0xc8] sm:$0xff]   ;;  %v3979_v15 = vld [vmem:[%s4932_s9 + $0x32] sm:$0x3]  ;;  %v5226_v16 = vpack.c.bf16 %v3978_v10, %v3978_v10  ;;  %v5235_v27 = vld [vmem:[%s4922_s16 + $0xd8] sm:$0xff]  }
  0x4a   : > { %v5229_v21 = vpack.c.bf16 %v3979_v15, %v3979_v15  ;;  %v5232_v22 = vld [vmem:[%s4922_s16 + $0xd0] sm:$0xff]   ;;  %v5256_v43 = vld [vmem:[%s4922_s16 + $0xe0] sm:$0xff]   ;;  %v5259_v56 = vld [vmem:[%s4922_s16 + $0xe8] sm:$0xff]  }
  0x4b   : > { %v3980_v28 = vld [vmem:[%s4932_s9 + $0x34] sm:$0x3]  ;;  %v3981_v33 = vld [vmem:[%s4932_s9 + $0x36] sm:$0x3]  ;;  %v3982_v61 = vld [vmem:[%s4932_s9 + $0x38] sm:$0x3] }
  0x4c   : > { %4294 = vmatmul.mubr.msk.bf16.vlgmr.msra.gmra.mxu0 %vm795_vm1, %v4986_v57  ;;  %4300 = vmatmul.mubr.msk.bf16.vlgmr.msra.gmra.mxu1 %vm795_vm1, %v4989_v58  ;;  %v5250_v34 = vpack.c.bf16 %v3980_v28, %v3980_v28  ;;  %v5253_v39 = vpack.c.bf16 %v3981_v33, %v3981_v33  ;;  %v3983_v10 = vld [vmem:[%s4932_s9 + $0x3a] sm:$0x3]  ;;  %v5274_v15 = vpack.c.bf16 %v3982_v61, %v3982_v61  ;;  %v5280_v33 = vld [vmem:[%s4922_s16 + $0xf0] sm:$0xff]   ;;  %v3985_v61 = vld [vmem:[%s4932_s9 + $0x3e] sm:$0x3] }
  0x4d   : > { %4304 = vmatpush3.bf16.msra.mxu0 %v4992_v59  ;;  %4310 = vmatpush3.bf16.msra.mxu1 %v4995_v60  ;;  %v5277_v28 = vpack.c.bf16 %v3983_v10, %v3983_v10 }
  0x4e   : > { %4305 = vmatprep.mubr.msk.bf16.mxu0 %vm4766_vm0, %v4765_v40  ;;  %4311 = vmatprep.mubr.msk.bf16.mxu1 %vm4766_vm0, %v4765_v40 }
  0x4f   : > { %4315 = vmatprep.subr.bf16.mxu0 %v4765_v40  ;;  %4321 = vmatprep.subr.bf16.mxu1 %v4765_v40 }
  0x54   : > { %4306 = vmatmul.mubr.msk.bf16.vlgmr.msra.gmra.mxu0 %vm795_vm1, %v5010_v63  ;;  %4312 = vmatmul.mubr.msk.bf16.vlgmr.msra.gmra.mxu1 %vm795_vm1, %v5013_v0 }
  0x55   : > { %4316 = vmatpush3.bf16.msra.mxu0 %v5016_v1  ;;  %4322 = vmatpush3.bf16.msra.mxu1 %v5019_v2 }
  0x56   : > { %4317 = vmatprep.mubr.msk.bf16.mxu0 %vm4766_vm0, %v4765_v40  ;;  %4323 = vmatprep.mubr.msk.bf16.mxu1 %vm4766_vm0, %v4765_v40 }
  0x57   : > { %4327 = vmatprep.subr.bf16.mxu0 %v4765_v40  ;;  %4333 = vmatprep.subr.bf16.mxu1 %v4765_v40 }
  0x5c   : > { %4318 = vmatmul.mubr.msk.bf16.vlgmr.msra.gmra.mxu0 %vm795_vm1, %v5034_v5  ;;  %4324 = vmatmul.mubr.msk.bf16.vlgmr.msra.gmra.mxu1 %vm795_vm1, %v5037_v6 }
  0x5d   : > { %4328 = vmatpush3.bf16.msra.mxu0 %v5040_v7  ;;  %4334 = vmatpush3.bf16.msra.mxu1 %v5043_v8 }
  0x5e   : > { %4329 = vmatprep.mubr.msk.bf16.mxu0 %vm4766_vm0, %v4765_v40  ;;  %4335 = vmatprep.mubr.msk.bf16.mxu1 %vm4766_vm0, %v4765_v40 }
  0x5f   : > { %4339 = vmatprep.subr.bf16.mxu0 %v4765_v40  ;;  %4345 = vmatprep.subr.bf16.mxu1 %v4765_v40 }
  0x64   : > { %4330 = vmatmul.mubr.msk.bf16.vlgmr.msra.gmra.mxu0 %vm795_vm1, %v5058_v11  ;;  %4336 = vmatmul.mubr.msk.bf16.vlgmr.msra.gmra.mxu1 %vm795_vm1, %v5061_v12 }
  0x65   : > { %4340 = vmatpush3.bf16.msra.mxu0 %v5064_v13  ;;  %4346 = vmatpush3.bf16.msra.mxu1 %v5067_v14 }
  0x66   : > { %4341 = vmatprep.mubr.msk.bf16.mxu0 %vm4766_vm0, %v4765_v40  ;;  %4347 = vmatprep.mubr.msk.bf16.mxu1 %vm4766_vm0, %v4765_v40 }
  0x67   : > { %4351 = vmatprep.subr.bf16.mxu0 %v4765_v40  ;;  %4357 = vmatprep.subr.bf16.mxu1 %v4765_v40 }
  0x6c   : > { %4342 = vmatmul.mubr.msk.bf16.vlgmr.msra.gmra.mxu0 %vm795_vm1, %v5082_v17  ;;  %4348 = vmatmul.mubr.msk.bf16.vlgmr.msra.gmra.mxu1 %vm795_vm1, %v5085_v18  ;;  %v5301_v18 = vpack.c.bf16 %v3985_v61, %v3985_v61 }
  0x6d   : > { %4352 = vmatpush3.bf16.msra.mxu0 %v5088_v19  ;;  %4358 = vmatpush3.bf16.msra.mxu1 %v5091_v20 }
  0x6e   : > { %4353 = vmatprep.mubr.msk.bf16.mxu0 %vm4766_vm0, %v4765_v40  ;;  %4359 = vmatprep.mubr.msk.bf16.mxu1 %vm4766_vm0, %v4765_v40 }
  0x6f   : > { %4363 = vmatprep.subr.bf16.mxu0 %v4765_v40  ;;  %4369 = vmatprep.subr.bf16.mxu1 %v4765_v40 }
  0x74   : > { %4354 = vmatmul.mubr.msk.bf16.vlgmr.msra.gmra.mxu0 %vm795_vm1, %v5106_v23  ;;  %4360 = vmatmul.mubr.msk.bf16.vlgmr.msra.gmra.mxu1 %vm795_vm1, %v5109_v24  ;;  %v5283_v24 = vld [vmem:[%s4922_s16 + $0xf8] sm:$0xff]  }
  0x75   : > { %4364 = vmatpush3.bf16.msra.mxu0 %v5112_v25  ;;  %4370 = vmatpush3.bf16.msra.mxu1 %v5115_v26  ;;  %v3984_v23 = vld [vmem:[%s4932_s9 + $0x3c] sm:$0x3] }
  0x76   : > { %4365 = vmatprep.mubr.msk.bf16.mxu0 %vm4766_vm0, %v4765_v40  ;;  %4371 = vmatprep.mubr.msk.bf16.mxu1 %vm4766_vm0, %v4765_v40  ;;  %v5298_v10 = vpack.c.bf16 %v3984_v23, %v3984_v23 }
  0x77   : > { %4375 = vmatprep.subr.bf16.mxu0 %v4765_v40  ;;  %4381 = vmatprep.subr.bf16.mxu1 %v4765_v40 }
  0x7c   : > { %4366 = vmatmul.mubr.msk.bf16.vlgmr.msra.gmra.mxu0 %vm795_vm1, %v5130_v29  ;;  %4372 = vmatmul.mubr.msk.bf16.vlgmr.msra.gmra.mxu1 %vm795_vm1, %v5133_v30 }
  0x7d   : > { %4376 = vmatpush3.bf16.msra.mxu0 %v5136_v31  ;;  %4382 = vmatpush3.bf16.msra.mxu1 %v5139_v32 }
  0x7e   : > { %4377 = vmatprep.mubr.msk.bf16.mxu0 %vm4766_vm0, %v4765_v40  ;;  %4383 = vmatprep.mubr.msk.bf16.mxu1 %vm4766_vm0, %v4765_v40 }
  0x7f   : > { %4387 = vmatprep.subr.bf16.mxu0 %v4765_v40  ;;  %4393 = vmatprep.subr.bf16.mxu1 %v4765_v40 }
  0x84   : > { %4378 = vmatmul.mubr.msk.bf16.vlgmr.msra.gmra.mxu0 %vm795_vm1, %v5154_v35  ;;  %4384 = vmatmul.mubr.msk.bf16.vlgmr.msra.gmra.mxu1 %vm795_vm1, %v5157_v36 }
  0x85   : > { %4388 = vmatpush3.bf16.msra.mxu0 %v5160_v37  ;;  %4394 = vmatpush3.bf16.msra.mxu1 %v5163_v38 }
  0x86   : > { %4389 = vmatprep.mubr.msk.bf16.mxu0 %vm4766_vm0, %v4765_v40  ;;  %4395 = vmatprep.mubr.msk.bf16.mxu1 %vm4766_vm0, %v4765_v40 }
  0x87   : > { %4399 = vmatprep.subr.bf16.mxu0 %v4765_v40  ;;  %4405 = vmatprep.subr.bf16.mxu1 %v4765_v40 }
  0x8c   : > { %4390 = vmatmul.mubr.msk.bf16.vlgmr.msra.gmra.mxu0 %vm795_vm1, %v5178_v44  ;;  %4396 = vmatmul.mubr.msk.bf16.vlgmr.msra.gmra.mxu1 %vm795_vm1, %v5181_v49 }
  0x8d   : > { %4400 = vmatpush3.bf16.msra.mxu0 %v5184_v50  ;;  %4406 = vmatpush3.bf16.msra.mxu1 %v5187_v55 }
  0x8e   : > { %4401 = vmatprep.mubr.msk.bf16.mxu0 %vm4766_vm0, %v4765_v40  ;;  %4407 = vmatprep.mubr.msk.bf16.mxu1 %vm4766_vm0, %v4765_v40 }
  0x8f   : > { %4411 = vmatprep.subr.bf16.mxu0 %v4765_v40  ;;  %4417 = vmatprep.subr.bf16.mxu1 %v4765_v40 }
  0x94   : > { %4402 = vmatmul.mubr.msk.bf16.vlgmr.msra.gmra.mxu0 %vm795_vm1, %v5202_v62  ;;  %4408 = vmatmul.mubr.msk.bf16.vlgmr.msra.gmra.mxu1 %vm795_vm1, %v5205_v3 }
  0x95   : > { %4412 = vmatpush3.bf16.msra.mxu0 %v5208_v4  ;;  %4418 = vmatpush3.bf16.msra.mxu1 %v5211_v9 }
  0x96   : > { %4413 = vmatprep.mubr.msk.bf16.mxu0 %vm4766_vm0, %v4765_v40  ;;  %4419 = vmatprep.mubr.msk.bf16.mxu1 %vm4766_vm0, %v4765_v40 }
  0x97   : > { %4423 = vmatprep.subr.bf16.mxu0 %v4765_v40  ;;  %4429 = vmatprep.subr.bf16.mxu1 %v4765_v40 }
  0x9c   : > { %4414 = vmatmul.mubr.msk.bf16.vlgmr.msra.gmra.mxu0 %vm795_vm1, %v5226_v16  ;;  %4420 = vmatmul.mubr.msk.bf16.vlgmr.msra.gmra.mxu1 %vm795_vm1, %v5229_v21 }
  0x9d   : > { %4424 = vmatpush3.bf16.msra.mxu0 %v5232_v22  ;;  %4430 = vmatpush3.bf16.msra.mxu1 %v5235_v27 }
  0x9e   : > { %4425 = vmatprep.mubr.msk.bf16.mxu0 %vm4766_vm0, %v4765_v40  ;;  %4431 = vmatprep.mubr.msk.bf16.mxu1 %vm4766_vm0, %v4765_v40 }
  0x9f   : > { %4435 = vmatprep.subr.bf16.mxu0 %v4765_v40  ;;  %4441 = vmatprep.subr.bf16.mxu1 %v4765_v40 }
  0xa4   : > { %4426 = vmatmul.mubr.msk.bf16.vlgmr.msra.gmra.mxu0 %vm795_vm1, %v5250_v34  ;;  %4432 = vmatmul.mubr.msk.bf16.vlgmr.msra.gmra.mxu1 %vm795_vm1, %v5253_v39 }
  0xa5   : > { %4436 = vmatpush3.bf16.msra.mxu0 %v5256_v43  ;;  %4442 = vmatpush3.bf16.msra.mxu1 %v5259_v56 }
  0xa6   : > { %4437 = vmatprep.mubr.msk.bf16.mxu0 %vm4766_vm0, %v4765_v40  ;;  %4443 = vmatprep.mubr.msk.bf16.mxu1 %vm4766_vm0, %v4765_v40 }
  0xa7   : > { %4447 = vmatprep.subr.bf16.mxu0 %v4765_v40  ;;  %4453 = vmatprep.subr.bf16.mxu1 %v4765_v40 }
  0xac   : > { %4438 = vmatmul.mubr.msk.bf16.vlgmr.msra.gmra.mxu0 %vm795_vm1, %v5274_v15  ;;  %4444 = vmatmul.mubr.msk.bf16.vlgmr.msra.gmra.mxu1 %vm795_vm1, %v5277_v28 }
  0xad   : > { %4448 = vmatpush3.bf16.msra.mxu0 %v5280_v33  ;;  %4454 = vmatpush3.bf16.msra.mxu1 %v5283_v24 }
  0xae   : > { %4449 = vmatprep.mubr.msk.bf16.mxu0 %vm4766_vm0, %v4765_v40  ;;  %4455 = vmatprep.mubr.msk.bf16.mxu1 %vm4766_vm0, %v4765_v40 }
  0xaf   : > { %4459 = vmatprep.subr.bf16.mxu0 %v4765_v40  ;;  %4465 = vmatprep.subr.bf16.mxu1 %v4765_v40 }
  0xb4   : > { %4450 = vmatmul.mubr.msk.bf16.vlgmr.msra.gmra.mxu0 %vm795_vm1, %v5298_v10  ;;  %4456 = vmatmul.mubr.msk.bf16.vlgmr.msra.gmra.mxu1 %vm795_vm1, %v5301_v18 }
  0xb5   : > { %4460 = vmatpush3.bf16.msra.mxu0 %v4925_v41  ;;  %4466 = vmatpush3.bf16.msra.mxu1 %v4928_v42 }
  0xb6   : > { %4461 = vmatprep.mubr.msk.bf16.mxu0 %vm4766_vm0, %v4765_v40  ;;  %4467 = vmatprep.mubr.msk.bf16.mxu1 %vm4766_vm0, %v4765_v40 }
  0xb7   : > { %4471 = vmatprep.subr.bf16.mxu0 %v4765_v40  ;;  %4477 = vmatprep.subr.bf16.mxu1 %v4765_v40 }
  0xbc   : > { %4462 = vmatmul.mubr.msk.bf16.vlgmr.msra.gmra.mxu0 %vm795_vm1, %v5130_v29  ;;  %4468 = vmatmul.mubr.msk.bf16.vlgmr.msra.gmra.mxu1 %vm795_vm1, %v5133_v30 }
  0xbd   : > { %4472 = vmatpush3.bf16.msra.mxu0 %v4943_v47  ;;  %4478 = vmatpush3.bf16.msra.mxu1 %v4947_v48 }
  0xbe   : > { %4473 = vmatprep.mubr.msk.bf16.mxu0 %vm4766_vm0, %v4765_v40  ;;  %4479 = vmatprep.mubr.msk.bf16.mxu1 %vm4766_vm0, %v4765_v40 }
  0xbf   : > { %4483 = vmatprep.subr.bf16.mxu0 %v4765_v40  ;;  %4489 = vmatprep.subr.bf16.mxu1 %v4765_v40 }
  0xc4   : > { %4474 = vmatmul.mubr.msk.bf16.vlgmr.msra.gmra.mxu0 %vm795_vm1, %v5154_v35  ;;  %4480 = vmatmul.mubr.msk.bf16.vlgmr.msra.gmra.mxu1 %vm795_vm1, %v5157_v36 }
  0xc5   : > { %4484 = vmatpush3.bf16.msra.mxu0 %v4968_v53  ;;  %4490 = vmatpush3.bf16.msra.mxu1 %v4971_v54 }
  0xc6   : > { %4485 = vmatprep.mubr.msk.bf16.mxu0 %vm4766_vm0, %v4765_v40  ;;  %4491 = vmatprep.mubr.msk.bf16.mxu1 %vm4766_vm0, %v4765_v40 }
  0xc7   : > { %4495 = vmatprep.subr.bf16.mxu0 %v4765_v40  ;;  %4501 = vmatprep.subr.bf16.mxu1 %v4765_v40 }
  0xcc   : > { %4486 = vmatmul.mubr.msk.bf16.vlgmr.msra.gmra.mxu0 %vm795_vm1, %v5178_v44  ;;  %4492 = vmatmul.mubr.msk.bf16.vlgmr.msra.gmra.mxu1 %vm795_vm1, %v5181_v49 }
  0xcd   : > { %4496 = vmatpush3.bf16.msra.mxu0 %v4992_v59  ;;  %4502 = vmatpush3.bf16.msra.mxu1 %v4995_v60 }
  0xce   : > { %4497 = vmatprep.mubr.msk.bf16.mxu0 %vm4766_vm0, %v4765_v40  ;;  %4503 = vmatprep.mubr.msk.bf16.mxu1 %vm4766_vm0, %v4765_v40 }
  0xcf   : > { %4507 = vmatprep.subr.bf16.mxu0 %v4765_v40  ;;  %4513 = vmatprep.subr.bf16.mxu1 %v4765_v40 }
  0xd4   : > { %4498 = vmatmul.mubr.msk.bf16.vlgmr.msra.gmra.mxu0 %vm795_vm1, %v5202_v62  ;;  %4504 = vmatmul.mubr.msk.bf16.vlgmr.msra.gmra.mxu1 %vm795_vm1, %v5205_v3 }
  0xd5   : > { %4508 = vmatpush3.bf16.msra.mxu0 %v5016_v1  ;;  %4514 = vmatpush3.bf16.msra.mxu1 %v5019_v2 }
  0xd6   : > { %4509 = vmatprep.mubr.msk.bf16.mxu0 %vm4766_vm0, %v4765_v40  ;;  %4515 = vmatprep.mubr.msk.bf16.mxu1 %vm4766_vm0, %v4765_v40 }
  0xd7   : > { %4519 = vmatprep.subr.bf16.mxu0 %v4765_v40  ;;  %4525 = vmatprep.subr.bf16.mxu1 %v4765_v40 }
  0xdc   : > { %4510 = vmatmul.mubr.msk.bf16.vlgmr.msra.gmra.mxu0 %vm795_vm1, %v5226_v16  ;;  %4516 = vmatmul.mubr.msk.bf16.vlgmr.msra.gmra.mxu1 %vm795_vm1, %v5229_v21 }
  0xdd   : > { %4520 = vmatpush3.bf16.msra.mxu0 %v5040_v7  ;;  %4526 = vmatpush3.bf16.msra.mxu1 %v5043_v8 }
  0xde   : > { %4521 = vmatprep.mubr.msk.bf16.mxu0 %vm4766_vm0, %v4765_v40  ;;  %4527 = vmatprep.mubr.msk.bf16.mxu1 %vm4766_vm0, %v4765_v40 }
  0xdf   : > { %4531 = vmatprep.subr.bf16.mxu0 %v4765_v40  ;;  %4537 = vmatprep.subr.bf16.mxu1 %v4765_v40 }
  0xe4   : > { %4522 = vmatmul.mubr.msk.bf16.vlgmr.msra.gmra.mxu0 %vm795_vm1, %v5250_v34  ;;  %4528 = vmatmul.mubr.msk.bf16.vlgmr.msra.gmra.mxu1 %vm795_vm1, %v5253_v39 }
  0xe5   : > { %4532 = vmatpush3.bf16.msra.mxu0 %v5064_v13  ;;  %4538 = vmatpush3.bf16.msra.mxu1 %v5067_v14 }
  0xe6   : > { %4533 = vmatprep.mubr.msk.bf16.mxu0 %vm4766_vm0, %v4765_v40  ;;  %4539 = vmatprep.mubr.msk.bf16.mxu1 %vm4766_vm0, %v4765_v40 }
  0xe7   : > { %4543 = vmatprep.subr.bf16.mxu0 %v4765_v40  ;;  %4549 = vmatprep.subr.bf16.mxu1 %v4765_v40 }
  0xec   : > { %4534 = vmatmul.mubr.msk.bf16.vlgmr.msra.gmra.mxu0 %vm795_vm1, %v5274_v15  ;;  %4540 = vmatmul.mubr.msk.bf16.vlgmr.msra.gmra.mxu1 %vm795_vm1, %v5277_v28  ;;  %v5701_v28 = vld [vmem:[#allocation6_spill] sm:$0xff] }
  0xed   : > { %4544 = vmatpush3.bf16.msra.mxu0 %v5088_v19  ;;  %4550 = vmatpush3.bf16.msra.mxu1 %v5091_v20 }
  0xee   : > { %4545 = vmatprep.mubr.msk.bf16.mxu0 %vm4766_vm0, %v4765_v40  ;;  %4551 = vmatprep.mubr.msk.bf16.mxu1 %vm4766_vm0, %v4765_v40 }
  0xef   : > { %4555 = vmatprep.subr.bf16.mxu0 %v4765_v40  ;;  %4561 = vmatprep.subr.bf16.mxu1 %v4765_v40 }
  0xf4   : > { %4546 = vmatmul.mubr.msk.bf16.vlgmr.msra.gmra.mxu0 %vm795_vm1, %v5298_v10  ;;  %4552 = vmatmul.mubr.msk.bf16.vlgmr.msra.gmra.mxu1 %vm795_vm1, %v5301_v18 }
  0xf5   : > { %4556 = vmatpush3.bf16.msra.mxu0 %v5112_v25  ;;  %4562 = vmatpush3.bf16.msra.mxu1 %v5115_v26 }
  0xf6   : > { %4557 = vmatprep.mubr.msk.bf16.mxu0 %vm4766_vm0, %v4765_v40  ;;  %4563 = vmatprep.mubr.msk.bf16.mxu1 %vm4766_vm0, %v4765_v40 }
  0xf7   : > { %4567 = vmatprep.subr.bf16.mxu0 %v4765_v40  ;;  %4573 = vmatprep.subr.bf16.mxu1 %v4765_v40 }
  0xfc   : > { %v5411_v41 = vpop.f32.mrf.mxu0  ;;  %4558 = vmatmul.mubr.msk.bf16.vlgmr.msra.gmra.mxu0 %vm795_vm1, %v4937_v45  ;;  %v5415_v42 = vpop.f32.mrf.mxu1  ;;  %4564 = vmatmul.mubr.msk.bf16.vlgmr.msra.gmra.mxu1 %vm795_vm1, %v4939_v46 }
  0xfd   : > { %4568 = vmatpush3.bf16.msra.mxu0 %v5136_v31  ;;  %4574 = vmatpush3.bf16.msra.mxu1 %v5139_v32 }
  0xfe   : > { %v4271_v47 = vpop.f32.mrf.mxu0  ;;  %4569 = vmatprep.mubr.msk.bf16.mxu0 %vm4766_vm0, %v4765_v40  ;;  %v4277_v48 = vpop.f32.mrf.mxu1  ;;  %4575 = vmatprep.mubr.msk.bf16.mxu1 %vm4766_vm0, %v4765_v40 }
  0xff   : > { %4579 = vmatprep.subr.bf16.mxu0 %v4765_v40  ;;  %4585 = vmatprep.subr.bf16.mxu1 %v4765_v40 }
 0x100   : > { %v836_v45 = vpop.f32.mrf.mxu0  ;;  %v885_v53 = vpop.f32.mrf.mxu1 }
 0x102   : > { %v4272_v54 = vpop.f32.mrf.mxu0  ;;  %v4278_v46 = vpop.f32.mrf.mxu1 }
 0x104   : > { %v5427_v59 = vpop.f32.mrf.mxu0  ;;  %4570 = vmatmul.mubr.msk.bf16.vlgmr.msra.gmra.mxu0 %vm795_vm1, %v4962_v51  ;;  %v5431_v60 = vpop.f32.mrf.mxu1  ;;  %4576 = vmatmul.mubr.msk.bf16.vlgmr.msra.gmra.mxu1 %vm795_vm1, %v4965_v52 }
 0x105   : > { %4580 = vmatpush3.bf16.msra.mxu0 %v5160_v37  ;;  %4586 = vmatpush3.bf16.msra.mxu1 %v5163_v38 }
 0x106   : > { %v4283_v1 = vpop.f32.mrf.mxu0  ;;  %4581 = vmatprep.mubr.msk.bf16.mxu0 %vm4766_vm0, %v4765_v40  ;;  %v4289_v2 = vpop.f32.mrf.mxu1  ;;  %4587 = vmatprep.mubr.msk.bf16.mxu1 %vm4766_vm0, %v4765_v40 }
 0x107   : > { %4591 = vmatprep.subr.bf16.mxu0 %v4765_v40  ;;  %4597 = vmatprep.subr.bf16.mxu1 %v4765_v40 }
 0x108   : > { %v934_v51 = vpop.f32.mrf.mxu0  ;;  %v983_v7 = vpop.f32.mrf.mxu1 }
 0x10a   : > { %v4284_v8 = vpop.f32.mrf.mxu0  ;;  %v4290_v52 = vpop.f32.mrf.mxu1 }
 0x10c   : > { %v5443_v13 = vpop.f32.mrf.mxu0  ;;  %4582 = vmatmul.mubr.msk.bf16.vlgmr.msra.gmra.mxu0 %vm795_vm1, %v4986_v57  ;;  %v5447_v14 = vpop.f32.mrf.mxu1  ;;  %4588 = vmatmul.mubr.msk.bf16.vlgmr.msra.gmra.mxu1 %vm795_vm1, %v4989_v58 }
 0x10d   : > { %4592 = vmatpush3.bf16.msra.mxu0 %v5184_v50  ;;  %4598 = vmatpush3.bf16.msra.mxu1 %v5187_v55 }
 0x10e   : > { %v4295_v18 = vpop.f32.mrf.mxu0  ;;  %4593 = vmatprep.mubr.msk.bf16.mxu0 %vm4766_vm0, %v4765_v40  ;;  %v4301_v19 = vpop.f32.mrf.mxu1  ;;  %4599 = vmatprep.mubr.msk.bf16.mxu1 %vm4766_vm0, %v4765_v40 }
 0x10f   : > { %4603 = vmatprep.subr.bf16.mxu0 %v4765_v40  ;;  %4609 = vmatprep.subr.bf16.mxu1 %v4765_v40 }
 0x110   : > { %v1032_v57 = vpop.f32.mrf.mxu0  ;;  %v1081_v20 = vpop.f32.mrf.mxu1 }
 0x112   : > { %v4296_v23 = vpop.f32.mrf.mxu0  ;;  %v4302_v58 = vpop.f32.mrf.mxu1 }
 0x114   : > { %v5459_v25 = vpop.f32.mrf.mxu0  ;;  %4594 = vmatmul.mubr.msk.bf16.vlgmr.msra.gmra.mxu0 %vm795_vm1, %v5010_v63  ;;  %v5463_v26 = vpop.f32.mrf.mxu1  ;;  %4600 = vmatmul.mubr.msk.bf16.vlgmr.msra.gmra.mxu1 %vm795_vm1, %v5013_v0 }
 0x115   : > { %4604 = vmatpush3.bf16.msra.mxu0 %v5208_v4  ;;  %4610 = vmatpush3.bf16.msra.mxu1 %v5211_v9 }
 0x116   : > { %v4307_v29 = vpop.f32.mrf.mxu0  ;;  %4605 = vmatprep.mubr.msk.bf16.mxu0 %vm4766_vm0, %v4765_v40  ;;  %v4313_v30 = vpop.f32.mrf.mxu1  ;;  %4611 = vmatprep.mubr.msk.bf16.mxu1 %vm4766_vm0, %v4765_v40 }
 0x117   : > { %4615 = vmatprep.subr.bf16.mxu0 %v4765_v40  ;;  %4621 = vmatprep.subr.bf16.mxu1 %v4765_v40 }
 0x118   : > { %v1130_v63 = vpop.f32.mrf.mxu0  ;;  %v1179_v31 = vpop.f32.mrf.mxu1 }
 0x11a   : > { %v4308_v32 = vpop.f32.mrf.mxu0  ;;  %v4314_v0 = vpop.f32.mrf.mxu1 }
 0x11c   : > { %v5475_v35 = vpop.f32.mrf.mxu0  ;;  %4606 = vmatmul.mubr.msk.bf16.vlgmr.msra.gmra.mxu0 %vm795_vm1, %v5034_v5  ;;  %v5479_v36 = vpop.f32.mrf.mxu1  ;;  %4612 = vmatmul.mubr.msk.bf16.vlgmr.msra.gmra.mxu1 %vm795_vm1, %v5037_v6 }
 0x11d   : > { %4616 = vmatpush3.bf16.msra.mxu0 %v5232_v22  ;;  %4622 = vmatpush3.bf16.msra.mxu1 %v5235_v27  ;;  %v5700_v22 = vld [vmem:[#allocation5_spill] sm:$0xff] }
 0x11e   : > { %v4319_v37 = vpop.f32.mrf.mxu0  ;;  %4617 = vmatprep.mubr.msk.bf16.mxu0 %vm4766_vm0, %v4765_v40  ;;  %v4325_v38 = vpop.f32.mrf.mxu1  ;;  %4623 = vmatprep.mubr.msk.bf16.mxu1 %vm4766_vm0, %v4765_v40 }
 0x11f   : > { %4627 = vmatprep.subr.bf16.mxu0 %v4765_v40  ;;  %4633 = vmatprep.subr.bf16.mxu1 %v4765_v40 }
 0x120   : > { %v1228_v5 = vpop.f32.mrf.mxu0  ;;  %v1277_v44 = vpop.f32.mrf.mxu1 }
 0x122   : > { %v4320_v49 = vpop.f32.mrf.mxu0  ;;  %v4326_v6 = vpop.f32.mrf.mxu1 }
 0x124   : > { %v5491_v50 = vpop.f32.mrf.mxu0  ;;  %4618 = vmatmul.mubr.msk.bf16.vlgmr.msra.gmra.mxu0 %vm795_vm1, %v5058_v11  ;;  %v5495_v55 = vpop.f32.mrf.mxu1  ;;  %4624 = vmatmul.mubr.msk.bf16.vlgmr.msra.gmra.mxu1 %vm795_vm1, %v5061_v12 }
 0x125   : > { %4628 = vmatpush3.bf16.msra.mxu0 %v5256_v43  ;;  %4634 = vmatpush3.bf16.msra.mxu1 %v5259_v56 }
 0x126   : > { %v4331_v62 = vpop.f32.mrf.mxu0  ;;  %4629 = vmatprep.mubr.msk.bf16.mxu0 %vm4766_vm0, %v4765_v40  ;;  %v4337_v3 = vpop.f32.mrf.mxu1  ;;  %4635 = vmatprep.mubr.msk.bf16.mxu1 %vm4766_vm0, %v4765_v40 }
 0x127   : > { %4639 = vmatprep.subr.bf16.mxu0 %v4765_v40  ;;  %4645 = vmatprep.subr.bf16.mxu1 %v4765_v40 }
 0x128   : > { %v1326_v11 = vpop.f32.mrf.mxu0  ;;  %v1375_v4 = vpop.f32.mrf.mxu1 }
 0x12a   : > { %v4332_v9 = vpop.f32.mrf.mxu0  ;;  %v4338_v12 = vpop.f32.mrf.mxu1 }
 0x12c   : > { %v5507_v16 = vpop.f32.mrf.mxu0  ;;  %4630 = vmatmul.mubr.msk.bf16.vlgmr.msra.gmra.mxu0 %vm795_vm1, %v5082_v17  ;;  %v5511_v21 = vpop.f32.mrf.mxu1  ;;  %4636 = vmatmul.mubr.msk.bf16.vlgmr.msra.gmra.mxu1 %vm795_vm1, %v5700_v22 }
 0x12d   : > { %4640 = vmatpush3.bf16.msra.mxu0 %v5280_v33  ;;  %4646 = vmatpush3.bf16.msra.mxu1 %v5283_v24  ;;  %v5702_v24 = vld [vmem:[#allocation7_spill] sm:$0xff] }
 0x12e   : > { %v4343_v27 = vpop.f32.mrf.mxu0  ;;  %4641 = vmatprep.mubr.msk.bf16.mxu0 %vm4766_vm0, %v4765_v40  ;;  %v4349_v34 = vpop.f32.mrf.mxu1  ;;  %4647 = vmatprep.mubr.msk.bf16.mxu1 %vm4766_vm0, %v4765_v40 }
 0x130   : > { %v1424_v39 = vpop.f32.mrf.mxu0  ;;  %v1473_v43 = vpop.f32.mrf.mxu1 }
 0x132   : > { %v4344_v17 = vpop.f32.mrf.mxu0  ;;  %v4350_v56 = vpop.f32.mrf.mxu1 }
 0x134   : > { %v5521_v15 = vpop.f32.mrf.mxu0  ;;  %4642 = vmatmul.mubr.msk.bf16.vlgmr.msra.gmra.mxu0 %vm795_vm1, %v5701_v28  ;;  %v5525_v33 = vpop.f32.mrf.mxu1  ;;  %4648 = vmatmul.mubr.msk.bf16.vlgmr.msra.gmra.mxu1 %vm795_vm1, %v5702_v24 }
 0x136   : > { %v4355_v61 = vpop.f32.mrf.mxu0  ;;  %v4361_v10 = vpop.f32.mrf.mxu1 }
 0x138   : > { %v1522_v47 = vpop.f32.mrf.mxu0  ;;  %v1571_v48 = vpop.f32.mrf.mxu1 }
 0x13a   : > { %v4356_v40 = vpop.f32.mrf.mxu0  ;;  %v4362_v45 = vpop.f32.mrf.mxu1 }
 0x13c   : > { %v1617_v53 = vpop.f32.mrf.mxu0  ;;  %v1666_v46 = vpop.f32.mrf.mxu1 }
 0x13d   : > { %v2358_v54 = vsub.f32 %v5411_v41, %v1617_v53  ;;  %v2359_v1 = vsub.f32 %v5415_v42, %v1666_v46 }
 0x13e   : > { %v4367_v2 = vpop.f32.mrf.mxu0  ;;  %v4373_v51 = vpop.f32.mrf.mxu1 }
 0x13f   : > { %3655 = vst.msk [vmem:[%s5532_s17] sm:$0x3] %vm3654_vm2, %v2358_v54  ;;  %3656 = vst.msk [vmem:[%s5532_s17 + $0x2] sm:$0x3] %vm3654_vm2, %v2359_v1 }
 0x140   : > { %v1620_v7 = vpop.f32.mrf.mxu0  ;;  %v1669_v8 = vpop.f32.mrf.mxu1 }
 0x142   : > { %v4368_v52 = vpop.f32.mrf.mxu0  ;;  %v4374_v18 = vpop.f32.mrf.mxu1 }
 0x144   : > { %v1715_v41 = vpop.f32.mrf.mxu0  ;;  %v1764_v42 = vpop.f32.mrf.mxu1 }
 0x145   : > { %v2360_v19 = vsub.f32 %v5427_v59, %v1715_v41  ;;  %v2361_v57 = vsub.f32 %v5431_v60, %v1764_v42 }
 0x146   : > { %v4379_v20 = vpop.f32.mrf.mxu0  ;;  %v4385_v23 = vpop.f32.mrf.mxu1 }
 0x147   : > { %3657 = vst.msk [vmem:[%s5532_s17 + $0x4] sm:$0x3] %vm3654_vm2, %v2360_v19  ;;  %3658 = vst.msk [vmem:[%s5532_s17 + $0x6] sm:$0x3] %vm3654_vm2, %v2361_v57 }
 0x148   : > { %v1718_v58 = vpop.f32.mrf.mxu0  ;;  %v1767_v29 = vpop.f32.mrf.mxu1 }
 0x14a   : > { %v4380_v30 = vpop.f32.mrf.mxu0  ;;  %v4386_v63 = vpop.f32.mrf.mxu1 }
 0x14c   : > { %v1813_v31 = vpop.f32.mrf.mxu0  ;;  %v1862_v59 = vpop.f32.mrf.mxu1 }
 0x14d   : > { %v2362_v32 = vsub.f32 %v5443_v13, %v1813_v31  ;;  %v2363_v0 = vsub.f32 %v5447_v14, %v1862_v59 }
 0x14e   : > { %v4391_v60 = vpop.f32.mrf.mxu0  ;;  %v4397_v37 = vpop.f32.mrf.mxu1 }
 0x14f   : > { %3659 = vst.msk [vmem:[%s5532_s17 + $0x8] sm:$0x3] %vm3654_vm2, %v2362_v32  ;;  %3660 = vst.msk [vmem:[%s5532_s17 + $0xa] sm:$0x3] %vm3654_vm2, %v2363_v0 }
 0x150   : > { %v1816_v38 = vpop.f32.mrf.mxu0  ;;  %v1865_v5 = vpop.f32.mrf.mxu1 }
 0x152   : > { %v4392_v44 = vpop.f32.mrf.mxu0  ;;  %v4398_v49 = vpop.f32.mrf.mxu1 }
 0x154   : > { %v1911_v6 = vpop.f32.mrf.mxu0  ;;  %v1960_v13 = vpop.f32.mrf.mxu1 }
 0x155   : > { %v2364_v62 = vsub.f32 %v5459_v25, %v1911_v6  ;;  %v2365_v3 = vsub.f32 %v5463_v26, %v1960_v13 }
 0x156   : > { %v4403_v14 = vpop.f32.mrf.mxu0  ;;  %v4409_v11 = vpop.f32.mrf.mxu1 }
 0x157   : > { %3661 = vst.msk [vmem:[%s5532_s17 + $0xc] sm:$0x3] %vm3654_vm2, %v2364_v62  ;;  %3662 = vst.msk [vmem:[%s5532_s17 + $0xe] sm:$0x3] %vm3654_vm2, %v2365_v3 }
 0x158   : > { %v1914_v4 = vpop.f32.mrf.mxu0  ;;  %v1963_v9 = vpop.f32.mrf.mxu1 }
 0x15a   : > { %v4404_v12 = vpop.f32.mrf.mxu0  ;;  %v4410_v22 = vpop.f32.mrf.mxu1 }
 0x15c   : > { %v2009_v27 = vpop.f32.mrf.mxu0  ;;  %v2058_v25 = vpop.f32.mrf.mxu1 }
 0x15d   : > { %v2366_v34 = vsub.f32 %v5475_v35, %v2009_v27  ;;  %v2367_v39 = vsub.f32 %v5479_v36, %v2058_v25 }
 0x15e   : > { %v4415_v26 = vpop.f32.mrf.mxu0  ;;  %v4421_v43 = vpop.f32.mrf.mxu1 }
 0x15f   : > { %3663 = vst.msk [vmem:[%s5532_s17 + $0x10] sm:$0x3] %vm3654_vm2, %v2366_v34  ;;  %3664 = vst.msk [vmem:[%s5532_s17 + $0x12] sm:$0x3] %vm3654_vm2, %v2367_v39 }
 0x160   : > { %v2012_v17 = vpop.f32.mrf.mxu0  ;;  %v2061_v56 = vpop.f32.mrf.mxu1 }
 0x162   : > { %v4416_v28 = vpop.f32.mrf.mxu0  ;;  %v4422_v24 = vpop.f32.mrf.mxu1 }
 0x164   : > { %v2107_v61 = vpop.f32.mrf.mxu0  ;;  %v2156_v35 = vpop.f32.mrf.mxu1 }
 0x165   : > { %v2368_v10 = vsub.f32 %v5491_v50, %v2107_v61  ;;  %v2369_v47 = vsub.f32 %v5495_v55, %v2156_v35 }
 0x166   : > { %v4427_v36 = vpop.f32.mrf.mxu0  ;;  %v4433_v48 = vpop.f32.mrf.mxu1 }
 0x167   : > { %3665 = vst.msk [vmem:[%s5532_s17 + $0x14] sm:$0x3] %vm3654_vm2, %v2368_v10  ;;  %3666 = vst.msk [vmem:[%s5532_s17 + $0x16] sm:$0x3] %vm3654_vm2, %v2369_v47 }
 0x168   : > { %v2110_v40 = vpop.f32.mrf.mxu0  ;;  %v2159_v45 = vpop.f32.mrf.mxu1 }
 0x16a   : > { %v4428_v53 = vpop.f32.mrf.mxu0  ;;  %v4434_v54 = vpop.f32.mrf.mxu1 }
 0x16c   : > { %v2205_v46 = vpop.f32.mrf.mxu0  ;;  %v2254_v50 = vpop.f32.mrf.mxu1 }
 0x16d   : > { %v2370_v1 = vsub.f32 %v5507_v16, %v2205_v46  ;;  %v2371_v2 = vsub.f32 %v5511_v21, %v2254_v50 }
 0x16e   : > { %v4439_v55 = vpop.f32.mrf.mxu0  ;;  %v4445_v51 = vpop.f32.mrf.mxu1 }
 0x16f   : > { %3667 = vst.msk [vmem:[%s5532_s17 + $0x18] sm:$0x3] %vm3654_vm2, %v2370_v1  ;;  %3668 = vst.msk [vmem:[%s5532_s17 + $0x1a] sm:$0x3] %vm3654_vm2, %v2371_v2 }
 0x170   : > { %v2208_v7 = vpop.f32.mrf.mxu0  ;;  %v2257_v8 = vpop.f32.mrf.mxu1 }
 0x172   : > { %v4440_v52 = vpop.f32.mrf.mxu0  ;;  %v4446_v18 = vpop.f32.mrf.mxu1 }
 0x174   : > { %v2303_v41 = vpop.f32.mrf.mxu0  ;;  %v2352_v42 = vpop.f32.mrf.mxu1 }
 0x175   : > { %v2372_v19 = vsub.f32 %v5521_v15, %v2303_v41  ;;  %v2373_v16 = vsub.f32 %v5525_v33, %v2352_v42 }
 0x176   : > { %v4451_v57 = vpop.f32.mrf.mxu0  ;;  %v4457_v21 = vpop.f32.mrf.mxu1 }
 0x177   : > { %3669 = vst.msk [vmem:[%s5532_s17 + $0x1c] sm:$0x3] %vm3654_vm2, %v2372_v19  ;;  %3670 = vst.msk [vmem:[%s5532_s17 + $0x1e] sm:$0x3] %vm3654_vm2, %v2373_v16 }
 0x178   : > { %v2306_v20 = vpop.f32.mrf.mxu0  ;;  %v2355_v23 = vpop.f32.mrf.mxu1 }
 0x17a   : > { %v4452_v58 = vpop.f32.mrf.mxu0  ;;  %v4458_v29 = vpop.f32.mrf.mxu1 }
 0x17c   : > { %v5580_v30 = vpop.f32.mrf.mxu0  ;;  %v5582_v63 = vpop.f32.mrf.mxu1 }
 0x17e   : > { %v4463_v31 = vpop.f32.mrf.mxu0  ;;  %v4469_v32 = vpop.f32.mrf.mxu1 }
 0x180   : > { %v2411_v15 = vpop.f32.mrf.mxu0  ;;  %v2451_v59 = vpop.f32.mrf.mxu1 }
 0x182   : > { %v4464_v0 = vpop.f32.mrf.mxu0  ;;  %v4470_v33 = vpop.f32.mrf.mxu1 }
 0x184   : > { %v5584_v60 = vpop.f32.mrf.mxu0  ;;  %v5586_v37 = vpop.f32.mrf.mxu1 }
 0x186   : > { %v4475_v38 = vpop.f32.mrf.mxu0  ;;  %v4481_v5 = vpop.f32.mrf.mxu1 }
 0x188   : > { %v2491_v44 = vpop.f32.mrf.mxu0  ;;  %v2531_v49 = vpop.f32.mrf.mxu1 }
 0x18a   : > { %v4476_v6 = vpop.f32.mrf.mxu0  ;;  %v4482_v62 = vpop.f32.mrf.mxu1 }
 0x18c   : > { %v5588_v13 = vpop.f32.mrf.mxu0  ;;  %v5590_v3 = vpop.f32.mrf.mxu1 }
 0x18e   : > { %v4487_v14 = vpop.f32.mrf.mxu0  ;;  %v4493_v11 = vpop.f32.mrf.mxu1 }
 0x190   : > { %v2571_v4 = vpop.f32.mrf.mxu0  ;;  %v2611_v9 = vpop.f32.mrf.mxu1 }
 0x192   : > { %v4488_v12 = vpop.f32.mrf.mxu0  ;;  %v4494_v22 = vpop.f32.mrf.mxu1 }
 0x194   : > { %v5592_v27 = vpop.f32.mrf.mxu0  ;;  %v5594_v34 = vpop.f32.mrf.mxu1 }
 0x196   : > { %v4499_v25 = vpop.f32.mrf.mxu0  ;;  %v4505_v39 = vpop.f32.mrf.mxu1 }
 0x198   : > { %v2651_v26 = vpop.f32.mrf.mxu0  ;;  %v2691_v43 = vpop.f32.mrf.mxu1 }
 0x19a   : > { %v4500_v17 = vpop.f32.mrf.mxu0  ;;  %v4506_v56 = vpop.f32.mrf.mxu1 }
 0x19c   : > { %v5596_v28 = vpop.f32.mrf.mxu0  ;;  %v5598_v24 = vpop.f32.mrf.mxu1 }
 0x19e   : > { %v4511_v61 = vpop.f32.mrf.mxu0  ;;  %v4517_v10 = vpop.f32.mrf.mxu1 }
 0x1a0   : > { %v2731_v35 = vpop.f32.mrf.mxu0  ;;  %v2771_v47 = vpop.f32.mrf.mxu1 }
 0x1a2   : > { %v4512_v36 = vpop.f32.mrf.mxu0  ;;  %v4518_v48 = vpop.f32.mrf.mxu1 }
 0x1a4   : > { %v5600_v40 = vpop.f32.mrf.mxu0  ;;  %v5602_v45 = vpop.f32.mrf.mxu1 }
 0x1a6   : > { %v4523_v53 = vpop.f32.mrf.mxu0  ;;  %v4529_v54 = vpop.f32.mrf.mxu1 }
 0x1a8   : > { %v2811_v46 = vpop.f32.mrf.mxu0  ;;  %v2851_v1 = vpop.f32.mrf.mxu1 }
 0x1aa   : > { %v4524_v50 = vpop.f32.mrf.mxu0  ;;  %v4530_v2 = vpop.f32.mrf.mxu1 }
 0x1ac   : > { %v5604_v55 = vpop.f32.mrf.mxu0  ;;  %v5606_v51 = vpop.f32.mrf.mxu1 }
 0x1ae   : > { %v4535_v7 = vpop.f32.mrf.mxu0  ;;  %v4541_v8 = vpop.f32.mrf.mxu1 }
 0x1b0   : > { %v2891_v52 = vpop.f32.mrf.mxu0  ;;  %v2931_v18 = vpop.f32.mrf.mxu1 }
 0x1b2   : > { %v4536_v41 = vpop.f32.mrf.mxu0  ;;  %v4542_v19 = vpop.f32.mrf.mxu1 }
 0x1b4   : > { %v5608_v42 = vpop.f32.mrf.mxu0  ;;  %v5610_v16 = vpop.f32.mrf.mxu1 }
 0x1b6   : > { %v4547_v57 = vpop.f32.mrf.mxu0  ;;  %v4553_v21 = vpop.f32.mrf.mxu1 }
 0x1b8   : > { %v2971_v20 = vpop.f32.mrf.mxu0  ;;  %v3011_v23 = vpop.f32.mrf.mxu1 }
 0x1ba   : > { %v4548_v58 = vpop.f32.mrf.mxu0  ;;  %v4554_v29 = vpop.f32.mrf.mxu1 }
 0x1bc   : > { %v3048_v31 = vpop.f32.mrf.mxu0  ;;  %v3088_v15 = vpop.f32.mrf.mxu1 }
 0x1bd   : > { %v3049_v32 = vadd.f32 %v3048_v31, %v5580_v30  ;;  %v3089_v59 = vadd.f32 %v3088_v15, %v5582_v63 }
 0x1be   : > { %v4559_v0 = vpop.f32.mrf.mxu0  ;;  %v4565_v33 = vpop.f32.mrf.mxu1 }
 0x1bf   : > { %4114 = vst.msk [vmem:[%s5532_s17 + $0x20] sm:$0x3] %vm3654_vm2, %v3049_v32  ;;  %4115 = vst.msk [vmem:[%s5532_s17 + $0x22] sm:$0x3] %vm3654_vm2, %v3089_v59 }
 0x1c0   : > { %v3051_v38 = vpop.f32.mrf.mxu0  ;;  %v3091_v5 = vpop.f32.mrf.mxu1 }
 0x1c2   : > { %v4560_v44 = vpop.f32.mrf.mxu0  ;;  %v4566_v49 = vpop.f32.mrf.mxu1 }
 0x1c4   : > { %v3128_v6 = vpop.f32.mrf.mxu0  ;;  %v3168_v30 = vpop.f32.mrf.mxu1 }
 0x1c5   : > { %v3129_v62 = vadd.f32 %v3128_v6, %v5584_v60  ;;  %v3169_v14 = vadd.f32 %v3168_v30, %v5586_v37 }
 0x1c6   : > { %v4571_v63 = vpop.f32.mrf.mxu0  ;;  %v4577_v11 = vpop.f32.mrf.mxu1 }
 0x1c7   : > { %4116 = vst.msk [vmem:[%s5532_s17 + $0x24] sm:$0x3] %vm3654_vm2, %v3129_v62  ;;  %4117 = vst.msk [vmem:[%s5532_s17 + $0x26] sm:$0x3] %vm3654_vm2, %v3169_v14 }
 0x1c8   : > { %v3131_v4 = vpop.f32.mrf.mxu0  ;;  %v3171_v9 = vpop.f32.mrf.mxu1 }
 0x1ca   : > { %v4572_v12 = vpop.f32.mrf.mxu0  ;;  %v4578_v22 = vpop.f32.mrf.mxu1 }
 0x1cb   : > { %v3731_v12 = vld [vmem:[%s5532_s17 + $0x10] sm:$0xff] (%p4821_p6)   ;;  %v3739_v22 = vld [vmem:[%s5532_s17 + $0x18] sm:$0xff] (%p4821_p6)  }
 0x1cc   : > { %v3208_v25 = vpop.f32.mrf.mxu0  ;;  %v3248_v60 = vpop.f32.mrf.mxu1  ;;  %3732 = vst [vmem:[%s3698_s23 + $0x10] sm:$0xff] (%p4821_p6), %v3731_v12   ;;  %3740 = vst [vmem:[%s3698_s23 + $0x18] sm:$0xff] (%p4821_p6), %v3739_v22  }
 0x1cd   : > { %v3209_v39 = vadd.f32 %v3208_v25, %v5588_v13  ;;  %v3249_v26 = vadd.f32 %v3248_v60, %v5590_v3 }
 0x1ce   : > { %v4583_v37 = vpop.f32.mrf.mxu0  ;;  %v4589_v43 = vpop.f32.mrf.mxu1  ;;  %v3747_v25 = vld [vmem:[%s5532_s17 + $0x20] sm:$0xff] (%p4821_p6)  }
 0x1cf   : > { %4118 = vst.msk [vmem:[%s5532_s17 + $0x28] sm:$0x3] %vm3654_vm2, %v3209_v39  ;;  %4119 = vst.msk [vmem:[%s5532_s17 + $0x2a] sm:$0x3] %vm3654_vm2, %v3249_v26 }
 0x1d0   : > { %v3211_v17 = vpop.f32.mrf.mxu0  ;;  %v3251_v56 = vpop.f32.mrf.mxu1  ;;  %3748 = vst [vmem:[%s3698_s23 + $0x40] sm:$0xff] (%p4821_p6), %v3747_v25  }
 0x1d2   : > { %v4584_v61 = vpop.f32.mrf.mxu0  ;;  %v4590_v10 = vpop.f32.mrf.mxu1 }
 0x1d4   : > { %v3288_v35 = vpop.f32.mrf.mxu0  ;;  %v3328_v13 = vpop.f32.mrf.mxu1 }
 0x1d5   : > { %v3289_v47 = vadd.f32 %v3288_v35, %v5592_v27  ;;  %v3329_v36 = vadd.f32 %v3328_v13, %v5594_v34 }
 0x1d6   : > { %v4595_v3 = vpop.f32.mrf.mxu0  ;;  %v4601_v48 = vpop.f32.mrf.mxu1 }
 0x1d7   : > { %4120 = vst.msk [vmem:[%s5532_s17 + $0x2c] sm:$0x3] %vm3654_vm2, %v3289_v47  ;;  %4121 = vst.msk [vmem:[%s5532_s17 + $0x2e] sm:$0x3] %vm3654_vm2, %v3329_v36 }
 0x1d8   : > { %v3291_v53 = vpop.f32.mrf.mxu0  ;;  %v3331_v54 = vpop.f32.mrf.mxu1 }
 0x1da   : > { %v4596_v46 = vpop.f32.mrf.mxu0  ;;  %v4602_v1 = vpop.f32.mrf.mxu1 }
 0x1dc   : > { %v3368_v50 = vpop.f32.mrf.mxu0  ;;  %v3408_v27 = vpop.f32.mrf.mxu1 }
 0x1dd   : > { %v3369_v2 = vadd.f32 %v3368_v50, %v5596_v28  ;;  %v3409_v7 = vadd.f32 %v3408_v27, %v5598_v24 }
 0x1de   : > { %v4607_v34 = vpop.f32.mrf.mxu0  ;;  %v4613_v8 = vpop.f32.mrf.mxu1  ;;  %v3755_v39 = vld [vmem:[%s5532_s17 + $0x28] sm:$0xff] (%p4821_p6)  }
 0x1df   : > { %4122 = vst.msk [vmem:[%s5532_s17 + $0x30] sm:$0x3] %vm3654_vm2, %v3369_v2  ;;  %4123 = vst.msk [vmem:[%s5532_s17 + $0x32] sm:$0x3] %vm3654_vm2, %v3409_v7 }
 0x1e0   : > { %v3371_v52 = vpop.f32.mrf.mxu0  ;;  %v3411_v18 = vpop.f32.mrf.mxu1  ;;  %3756 = vst [vmem:[%s3698_s23 + $0x48] sm:$0xff] (%p4821_p6), %v3755_v39  }
 0x1e2   : > { %v4608_v41 = vpop.f32.mrf.mxu0  ;;  %v4614_v19 = vpop.f32.mrf.mxu1 }
 0x1e4   : > { %v3448_v57 = vpop.f32.mrf.mxu0  ;;  %v3488_v28 = vpop.f32.mrf.mxu1 }
 0x1e5   : > { %v3449_v21 = vadd.f32 %v3448_v57, %v5600_v40  ;;  %v3489_v20 = vadd.f32 %v3488_v28, %v5602_v45 }
 0x1e6   : > { %v4619_v24 = vpop.f32.mrf.mxu0  ;;  %v4625_v23 = vpop.f32.mrf.mxu1 }
 0x1e7   : > { %4124 = vst.msk [vmem:[%s5532_s17 + $0x34] sm:$0x3] %vm3654_vm2, %v3449_v21  ;;  %4125 = vst.msk [vmem:[%s5532_s17 + $0x36] sm:$0x3] %vm3654_vm2, %v3489_v20 }
 0x1e8   : > { %v3451_v58 = vpop.f32.mrf.mxu0  ;;  %v3491_v29 = vpop.f32.mrf.mxu1 }
 0x1ea   : > { %v4620_v31 = vpop.f32.mrf.mxu0  ;;  %v4626_v32 = vpop.f32.mrf.mxu1 }
 0x1ec   : > { %v3528_v15 = vpop.f32.mrf.mxu0  ;;  %v3568_v40 = vpop.f32.mrf.mxu1 }
 0x1ed   : > { %v3529_v59 = vadd.f32 %v3528_v15, %v5604_v55  ;;  %v3569_v0 = vadd.f32 %v3568_v40, %v5606_v51 }
 0x1ee   : > { %v4631_v45 = vpop.f32.mrf.mxu0  ;;  %v4637_v33 = vpop.f32.mrf.mxu1  ;;  %v3763_v60 = vld [vmem:[%s5532_s17 + $0x30] sm:$0xff] (%p4821_p6)  }
 0x1ef   : > { %4126 = vst.msk [vmem:[%s5532_s17 + $0x38] sm:$0x3] %vm3654_vm2, %v3529_v59  ;;  %4127 = vst.msk [vmem:[%s5532_s17 + $0x3a] sm:$0x3] %vm3654_vm2, %v3569_v0 }
 0x1f0   : > { %v3531_v38 = vpop.f32.mrf.mxu0  ;;  %v3571_v5 = vpop.f32.mrf.mxu1  ;;  %3764 = vst [vmem:[%s3698_s23 + $0x50] sm:$0xff] (%p4821_p6), %v3763_v60  }
 0x1f2   : > { %v4632_v44 = vpop.f32.mrf.mxu0  ;;  %v4638_v49 = vpop.f32.mrf.mxu1 }
 0x1f4   : > { %v3608_v6 = vpop.f32.mrf.mxu0  ;;  %v3648_v30 = vpop.f32.mrf.mxu1 }
 0x1f5   : > { %v3609_v62 = vadd.f32 %v3608_v6, %v5608_v42  ;;  %v3649_v55 = vadd.f32 %v3648_v30, %v5610_v16  ;;  %v3715_v42 = vld [vmem:[%s5532_s17] sm:$0xff] (%p4821_p6)   ;;  %v3723_v16 = vld [vmem:[%s5532_s17 + $0x8] sm:$0xff] (%p4821_p6)  }
 0x1f6   : > { %v4643_v14 = vpop.f32.mrf.mxu0  ;;  %v4649_v51 = vpop.f32.mrf.mxu1  ;;  %3694 = sbr.rel (!%p4821_p6) target bundleno = 512 (0x200), region = 114  ;;  %3716 = vst [vmem:[%s3698_s23] sm:$0xff] (%p4821_p6), %v3715_v42   ;;  %3724 = vst [vmem:[%s3698_s23 + $0x8] sm:$0xff] (%p4821_p6), %v3723_v16  }
 0x1f7   : > { %4128 = vst.msk [vmem:[%s5532_s17 + $0x3c] sm:$0x3] %vm3654_vm2, %v3609_v62  ;;  %4129 = vst.msk [vmem:[%s5532_s17 + $0x3e] sm:$0x3] %vm3654_vm2, %v3649_v55 }
 0x1f8   : > { %v3611_v63 = vpop.f32.mrf.mxu0  ;;  %v3651_v11 = vpop.f32.mrf.mxu1 }
 0x1fa   : > { %v4644_v4 = vpop.f32.mrf.mxu0  ;;  %v4650_v9 = vpop.f32.mrf.mxu1 }
 0x1fe   : > { %v3771_v26 = vld [vmem:[%s5532_s17 + $0x38] sm:$0xff]  }
 0x1ff   : > { %3772 = vst [vmem:[%s3698_s23 + $0x58] sm:$0xff] %v3771_v26  }
 0x200 PF: > { %s12_s13 = sadd.s32 1, %s4763_s13   ;;  %s5703_s9 = smov %s4751_s10 }
 0x201   : > { %p9_p11 = scmp.ge.s32.totalorder %s12_s13, 4   ;;  %s5704_s10 = smov %s4826_s20 }
 0x202   : > { %s5705_s11 = smov %s4759_s12  ;;  %s5706_s12 = smov %s5708_s14 }
 0x203   :  { %11 = sbr.rel (!%p9_p11) target bundleno = 3 (0x3), region = 197 }

</bundles_post_ra>
